<compile_context>
chip_gen: v7x
topology: tpu7x:2x2x1
jax: 0.10.0
libtpu: 0.0.40
codegen_flags: <defaults>
</compile_context>

<pallas_src>
import jax
import jax.numpy as jnp
import numpy as np
from jax.experimental import pallas as pl
from jax.experimental.pallas import tpu as pltpu


# ------------------------------ small helpers -------------------------------

def _round_up(x, m):
    return (x + m - 1) // m * m


def _pad2(a, shape):
    return jnp.pad(a, [(0, s - d) for d, s in zip(a.shape, shape)])


def _pack_lstm_matrix(w, din_p):
    """torch (4H, Din) with [i|f|g|o] row blocks -> bf16 (din_p, 4H)."""
    four_h, din = w.shape
    wp = jnp.zeros((four_h, din_p), jnp.float32).at[:, :din].set(w)
    return wp.T.astype(jnp.bfloat16)


# ------------------------------ fused kernel --------------------------------

def _make_fused_kernel(num_layers, tile_t, bp, hdim, t_real, mask_time):
    """Fused LSTM-stack + MLP-head kernel for static sizes.

    Gate layout: packed 4*hdim lanes per row, blocks [i | f | g | o] each of
    width hdim (no per-gate padding).  h/c/seq carry exactly hdim lanes.
    """

    def kernel(*refs):
        # ---- unpack refs: inputs, output, scratch ---------------------------
        x_ref = refs[0]                                   # (tile_t*Bp, Dp) bf16
        lstm = [(refs[1 + 3 * l], refs[2 + 3 * l], refs[3 + 3 * l])
                for l in range(num_layers)]               # (w_ih, w_hh, b)
        base = 1 + 3 * num_layers
        w1, b1, w2, b2, w3, b3 = refs[base:base + 6]
        out_ref = refs[base + 6]                          # (L*Bp, Cp) f32
        h_st, c_st, gx_buf, seq_buf = refs[base + 7:base + 11]

        blk = pl.program_id(0)
        nblk = pl.num_programs(0)

        @pl.when(blk == 0)
        def _init():
            h_st[...] = jnp.zeros_like(h_st)
            c_st[...] = jnp.zeros_like(c_st)

        # ---- stacked LSTM layers over this time tile ------------------------
        for l in range(num_layers):
            w_ih_ref, w_hh_ref, b_ref = lstm[l]
            src = x_ref[...] if l == 0 else seq_buf[...]

            # Hoisted input projection: ONE bf16 MXU matmul for the whole tile.
            gx_buf[...] = (
                jnp.dot(src.astype(jnp.bfloat16), w_ih_ref[...],
                        preferred_element_type=jnp.float32)
                + b_ref[...]
            )

            write_seq = l < num_layers - 1                # next layer needs it

            def step(t, carry, _w_hh_ref=w_hh_ref, _write_seq=write_seq):
                h_prev, c_prev = carry                    # f32 (Bp, H)
                row = pl.multiple_of(t * bp, bp)
                # Per-step serial chain: small bf16 matmul (N = 4*H) + gates.
                gates = (gx_buf[pl.ds(row, bp), :]
                         + jnp.dot(h_prev.astype(jnp.bfloat16), _w_hh_ref[...],
                                   preferred_element_type=jnp.float32))
                sig = jax.nn.sigmoid(gates)               # 1 EUP vreg (4H lanes)
                tnh = jnp.tanh(gates)                     # 1 EUP vreg
                i_g = sig[:, 0:hdim]
                f_g = sig[:, hdim:2 * hdim]
                g_g = tnh[:, 2 * hdim:3 * hdim]
                o_g = sig[:, 3 * hdim:4 * hdim]
                c_new = f_g * c_prev + i_g * g_g
                h_new = o_g * jnp.tanh(c_new)             # 1 EUP vreg
                if mask_time:
                    valid = (blk * tile_t + t) < t_real
                    h_new = jnp.where(valid, h_new, h_prev)
                    c_new = jnp.where(valid, c_new, c_prev)
                if _write_seq:
                    seq_buf[pl.ds(row, bp), :] = h_new
                return h_new, c_new

            h_last, c_last = jax.lax.fori_loop(
                0, tile_t, step, (h_st[l], c_st[l]), unroll=True)
            h_st[l] = h_last
            c_st[l] = c_last

        # ---- MLP head on hn = final hidden state of every layer -------------
        @pl.when(blk == nblk - 1)
        def _head():
            hn = h_st[...].reshape(num_layers * bp, hdim)      # hn.view(-1, H)
            y = jnp.dot(hn.astype(jnp.bfloat16), w1[...],
                        preferred_element_type=jnp.float32) + b1[...]
            y = jnp.maximum(y, 0.0)
            y = jnp.dot(y.astype(jnp.bfloat16), w2[...],
                        preferred_element_type=jnp.float32) + b2[...]
            y = jnp.maximum(y, 0.0)
            out_ref[...] = (jnp.dot(y.astype(jnp.bfloat16), w3[...],
                                    preferred_element_type=jnp.float32)
                            + b3[...])

    return kernel


# --------------------------------- wrapper ----------------------------------

def lstm_model_forward(x_btd, kp):
    """x_btd: (B, T, input_size), batch_first like the PyTorch module.

    Returns (num_layers * B, num_classes), matching
        out = fc_3(relu(fc_2(relu(fc_1(hn.view(-1, H)))))).
    """
    B, T, D = x_btd.shape
    L = kp["num_layers"]
    H, C = kp["hidden_size"], kp["num_classes"]
    Dp, Cp = kp["Dp"], kp["Cp"]
    Bp = _round_up(B, 8)

    tile_t = min(T, 32)
    Tp = _round_up(T, tile_t)
    mask_time = Tp != T                # padded timesteps must not update h/c

    # Host-side layout: time-major, pad time/batch/feature, flatten to a 2D
    # bf16 slab so every in-kernel op is (8,128)-friendly.
    x = jnp.transpose(x_btd, (1, 0, 2)).astype(jnp.float32)      # (T, B, D)
    x = jnp.pad(x, ((0, Tp - T), (0, Bp - B), (0, Dp - D)))      # (Tp, Bp, Dp)
    x2 = x.reshape(Tp * Bp, Dp).astype(jnp.bfloat16)

    def full_spec(arr):
        nd = arr.ndim
        return pl.BlockSpec(arr.shape, lambda t, _n=nd: (0,) * _n)

    in_specs = [pl.BlockSpec((tile_t * Bp, Dp), lambda t: (t, 0))]
    inputs = [x2]
    for (w_ih, w_hh, b) in kp["lstm"]:
        for a in (w_ih, w_hh, b):
            in_specs.append(full_spec(a))
            inputs.append(a)
    for a in kp["head"]:
        in_specs.append(full_spec(a))
        inputs.append(a)

    out_shape = jax.ShapeDtypeStruct((L * Bp, Cp), jnp.float32)
    out_spec = pl.BlockSpec((L * Bp, Cp), lambda t: (0, 0))

    kernel = _make_fused_kernel(L, tile_t, Bp, H, T, mask_time)

    out_padded = pl.pallas_call(
        kernel,
        out_shape=out_shape,
        grid_spec=pltpu.PrefetchScalarGridSpec(
            num_scalar_prefetch=0,
            grid=(Tp // tile_t,),
            in_specs=in_specs,
            out_specs=out_spec,
            scratch_shapes=[
                pltpu.VMEM((L, Bp, H), jnp.float32),             # h carry / layer
                pltpu.VMEM((L, Bp, H), jnp.float32),             # c carry / layer
                pltpu.VMEM((tile_t * Bp, 4 * H), jnp.float32),   # hoisted gates_x
                pltpu.VMEM((tile_t * Bp, H), jnp.float32),       # layer out seq
            ]),
        compiler_params=pltpu.CompilerParams(
            dimension_semantics=("arbitrary",),
            vmem_limit_bytes=32 * 1024 * 1024),
    )(*inputs)

    # Undo padding: (L*Bp, Cp) -> (L, Bp, Cp) -> real batch & classes -> (L*B, C)
    out = out_padded.reshape(L, Bp, Cp)[:, :B, :C].reshape(L * B, C)
    return out


# --------------------------- parameter creation ------------------------------

def init_params(key, num_classes, input_size, hidden_size, num_layers):
    """Raw, torch-layout parameters (exactly what nn.LSTM / nn.Linear store)."""
    raw = {"num_classes": num_classes, "input_size": input_size,
           "hidden_size": hidden_size, "num_layers": num_layers,
           "lstm": [], "head": None}

    def uni(key, shape, bound):
        return jax.random.uniform(key, shape, jnp.float32, -bound, bound)

    k_lstm = 1.0 / np.sqrt(hidden_size)
    for layer in range(num_layers):
        d_in = input_size if layer == 0 else hidden_size
        key, k1, k2, k3, k4 = jax.random.split(key, 5)
        w_ih = uni(k1, (4 * hidden_size, d_in), k_lstm)
        w_hh = uni(k2, (4 * hidden_size, hidden_size), k_lstm)
        b_ih = uni(k3, (4 * hidden_size,), k_lstm)
        b_hh = uni(k4, (4 * hidden_size,), k_lstm)
        raw["lstm"].append((w_ih, w_hh, b_ih, b_hh))

    def linear(key, fan_in, fan_out):
        kb = 1.0 / np.sqrt(fan_in)
        k1, k2 = jax.random.split(key)
        return uni(k1, (fan_out, fan_in), kb), uni(k2, (fan_out,), kb)

    key, kf1, kf2, kf3 = jax.random.split(key, 4)
    raw["head"] = (linear(kf1, hidden_size, 512),
                   linear(kf2, 512, 256),
                   linear(kf3, 256, num_classes))
    return raw


def pack_params(raw):
    """Pad/transpose raw params into the kernel layout (bf16 weights, f32 bias).

    Gate packing uses exactly 4*H lanes (no per-gate padding); only the layer-0
    input feature dim and the final class dim are padded to 128 lanes.
    """
    H, D, C, L = (raw["hidden_size"], raw["input_size"],
                  raw["num_classes"], raw["num_layers"])
    Dp, Cp = _round_up(D, 128), _round_up(C, 128)

    lstm_packed = []
    for l, (w_ih, w_hh, b_ih, b_hh) in enumerate(raw["lstm"]):
        din_p = Dp if l == 0 else H
        lstm_packed.append((
            _pack_lstm_matrix(w_ih, din_p),                         # bf16 (Din_p, 4H)
            _pack_lstm_matrix(w_hh, H),                             # bf16 (H, 4H)
            (b_ih + b_hh).reshape(1, 4 * H).astype(jnp.float32),    # f32  (1, 4H)
        ))

    (w1, b1), (w2, b2), (w3, b3) = raw["head"]
    head_packed = (
        w1.T.astype(jnp.bfloat16), b1.reshape(1, -1),
        w2.T.astype(jnp.bfloat16), b2.reshape(1, -1),
        _pad2(w3.T, (w3.shape[1], Cp)).astype(jnp.bfloat16),
        _pad2(b3.reshape(1, -1), (1, Cp)),
    )

    return {"hidden_size": H, "num_classes": C, "num_layers": L,
            "Dp": Dp, "Cp": Cp,
            "lstm": lstm_packed, "head": head_packed}


# ---------------------------- pure-JAX reference -----------------------------

def reference_forward(x_btd, raw):
    H = raw["hidden_size"]
    x = jnp.transpose(x_btd, (1, 0, 2)).astype(jnp.float32)
    hlasts = []
    for (w_ih, w_hh, b_ih, b_hh) in raw["lstm"]:
        T, B, _ = x.shape
        h = jnp.zeros((B, H), jnp.float32)
        c = jnp.zeros((B, H), jnp.float32)
        hs = []
        for t in range(T):
            gates = x[t] @ w_ih.T + h @ w_hh.T + b_ih + b_hh
            i = jax.nn.sigmoid(gates[:, 0:H])
            f = jax.nn.sigmoid(gates[:, H:2 * H])
            g = jnp.tanh(gates[:, 2 * H:3 * H])
            o = jax.nn.sigmoid(gates[:, 3 * H:4 * H])
            c = f * c + i * g
            h = o * jnp.tanh(c)
            hs.append(h)
        x = jnp.stack(hs, axis=0)
        hlasts.append(h)
    hn = jnp.stack(hlasts, axis=0).reshape(-1, H)
    (w1, b1), (w2, b2), (w3, b3) = raw["head"]
    out = jnp.maximum(hn @ w1.T + b1, 0.0)
    out = jnp.maximum(out @ w2.T + b2, 0.0)
    return out @ w3.T + b3


# ----------------------------------- main ------------------------------------

if __name__ == "__main__":
    num_classes = 3
    input_size = 8
    hidden_size = 32
    num_layers = 2
    batch = 2
    seq = 8

    key = jax.random.PRNGKey(0)
    k_params, k_x = jax.random.split(key)
    raw = init_params(k_params, num_classes, input_size, hidden_size, num_layers)
    kp = pack_params(raw)
    x = jax.random.normal(k_x, (batch, seq, input_size), jnp.float32)

    out = jax.block_until_ready(lstm_model_forward(x, kp))
    ref = jax.block_until_ready(reference_forward(x, raw))

    assert out.shape == (num_layers * batch, num_classes), out.shape
    # bf16 MXU operands (f32 accumulation) -> relaxed tolerance vs f32 reference.
    np.testing.assert_allclose(np.asarray(out), np.asarray(ref),
                               rtol=2e-2, atol=2e-2)

    print("KERNEL_OK")
</pallas_src>

<mosaic_0001>
module attributes {stable_mosaic.version = 11 : i64} {
  func.func @kernel(%arg0: i32, %arg1: memref<64x128xbf16, #tpu.memory_space<vmem>>, %arg2: memref<128x128xbf16, #tpu.memory_space<vmem>>, %arg3: memref<32x128xbf16, #tpu.memory_space<vmem>>, %arg4: memref<1x128xf32, #tpu.memory_space<vmem>>, %arg5: memref<32x128xbf16, #tpu.memory_space<vmem>>, %arg6: memref<32x128xbf16, #tpu.memory_space<vmem>>, %arg7: memref<1x128xf32, #tpu.memory_space<vmem>>, %arg8: memref<32x512xbf16, #tpu.memory_space<vmem>>, %arg9: memref<1x512xf32, #tpu.memory_space<vmem>>, %arg10: memref<512x256xbf16, #tpu.memory_space<vmem>>, %arg11: memref<1x256xf32, #tpu.memory_space<vmem>>, %arg12: memref<256x128xbf16, #tpu.memory_space<vmem>>, %arg13: memref<1x128xf32, #tpu.memory_space<vmem>>, %arg14: memref<16x128xf32, #tpu.memory_space<vmem>>, %arg15: memref<2x8x32xf32, #tpu.memory_space<vmem>>, %arg16: memref<2x8x32xf32, #tpu.memory_space<vmem>>, %arg17: memref<64x128xf32, #tpu.memory_space<vmem>>, %arg18: memref<64x32xf32, #tpu.memory_space<vmem>>) attributes {dimension_semantics = [#tpu.dimension_semantics<arbitrary>], iteration_bounds = array<i64: 1>, scalar_prefetch = 0 : i64, scratch_operands = 4 : i64, tpu.core_type = #tpu.core_type<tc>, window_params = [{transform_indices = @transform_0, window_bounds = array<i64: 64, 128>}, {pipeline_mode = #tpu.pipeline_mode<synchronous>, transform_indices = @transform_1, window_bounds = array<i64: 128, 128>}, {pipeline_mode = #tpu.pipeline_mode<synchronous>, transform_indices = @transform_2, window_bounds = array<i64: 32, 128>}, {pipeline_mode = #tpu.pipeline_mode<synchronous>, transform_indices = @transform_3, window_bounds = array<i64: 1, 128>}, {pipeline_mode = #tpu.pipeline_mode<synchronous>, transform_indices = @transform_4, window_bounds = array<i64: 32, 128>}, {pipeline_mode = #tpu.pipeline_mode<synchronous>, transform_indices = @transform_5, window_bounds = array<i64: 32, 128>}, {pipeline_mode = #tpu.pipeline_mode<synchronous>, transform_indices = @transform_6, window_bounds = array<i64: 1, 128>}, {pipeline_mode = #tpu.pipeline_mode<synchronous>, transform_indices = @transform_7, window_bounds = array<i64: 32, 512>}, {pipeline_mode = #tpu.pipeline_mode<synchronous>, transform_indices = @transform_8, window_bounds = array<i64: 1, 512>}, {pipeline_mode = #tpu.pipeline_mode<synchronous>, transform_indices = @transform_9, window_bounds = array<i64: 512, 256>}, {pipeline_mode = #tpu.pipeline_mode<synchronous>, transform_indices = @transform_10, window_bounds = array<i64: 1, 256>}, {pipeline_mode = #tpu.pipeline_mode<synchronous>, transform_indices = @transform_11, window_bounds = array<i64: 256, 128>}, {pipeline_mode = #tpu.pipeline_mode<synchronous>, transform_indices = @transform_12, window_bounds = array<i64: 1, 128>}, {pipeline_mode = #tpu.pipeline_mode<synchronous>, transform_indices = @transform_13, window_bounds = array<i64: 16, 128>}]} {
    %c0_i32 = arith.constant 0 : i32
    %0 = arith.cmpi eq, %arg0, %c0_i32 : i32
    %1 = arith.extui %0 : i1 to i32
    %c0_i32_0 = arith.constant 0 : i32
    %2 = arith.cmpi ne, %1, %c0_i32_0 : i32
    scf.if %2 {
      %cst_156 = arith.constant 0.000000e+00 : f32
      %425 = vector.broadcast %cst_156 : f32 to vector<2x8x32xf32>
      %c0_157 = arith.constant 0 : index
      %c0_158 = arith.constant 0 : index
      %c0_159 = arith.constant 0 : index
      %426 = vector.load %arg15[%c0_157, %c0_158, %c0_159] : memref<2x8x32xf32, #tpu.memory_space<vmem>>, vector<2x8x32xf32>
      tpu.vector_store %arg15[%c0_157, %c0_158, %c0_159], %425 {strides = array<i32>} : memref<2x8x32xf32, #tpu.memory_space<vmem>>, vector<2x8x32xf32>,
      %cst_160 = arith.constant 0.000000e+00 : f32
      %427 = vector.broadcast %cst_160 : f32 to vector<2x8x32xf32>
      %c0_161 = arith.constant 0 : index
      %c0_162 = arith.constant 0 : index
      %c0_163 = arith.constant 0 : index
      %428 = vector.load %arg16[%c0_161, %c0_162, %c0_163] : memref<2x8x32xf32, #tpu.memory_space<vmem>>, vector<2x8x32xf32>
      tpu.vector_store %arg16[%c0_161, %c0_162, %c0_163], %427 {strides = array<i32>} : memref<2x8x32xf32, #tpu.memory_space<vmem>>, vector<2x8x32xf32>,
    } else {
    }
    %c0 = arith.constant 0 : index
    %c0_1 = arith.constant 0 : index
    %3 = vector.load %arg1[%c0, %c0_1] : memref<64x128xbf16, #tpu.memory_space<vmem>>, vector<64x128xbf16>
    %c0_2 = arith.constant 0 : index
    %c0_3 = arith.constant 0 : index
    %4 = vector.load %arg2[%c0_2, %c0_3] : memref<128x128xbf16, #tpu.memory_space<vmem>>, vector<128x128xbf16>
    %cst = arith.constant dense<0.000000e+00> : vector<64x128xf32>
    %5 = tpu.matmul %3, %4, %cst {dimension_numbers = #tpu.dot_dimension_numbers<[1], [0], [0], [1], [0, 0, 1, 1], [], []>} : vector<64x128xbf16>, vector<128x128xbf16>, vector<64x128xf32> -> vector<64x128xf32>
    %c0_4 = arith.constant 0 : index
    %c0_5 = arith.constant 0 : index
    %6 = vector.load %arg4[%c0_4, %c0_5] : memref<1x128xf32, #tpu.memory_space<vmem>>, vector<1x128xf32>
    %7 = vector.broadcast %6 : vector<1x128xf32> to vector<64x128xf32>
    %8 = arith.addf %5, %7 : vector<64x128xf32>
    %c0_6 = arith.constant 0 : index
    %c0_7 = arith.constant 0 : index
    %9 = vector.load %arg17[%c0_6, %c0_7] : memref<64x128xf32, #tpu.memory_space<vmem>>, vector<64x128xf32>
    tpu.vector_store %arg17[%c0_6, %c0_7], %8 {strides = array<i32>} : memref<64x128xf32, #tpu.memory_space<vmem>>, vector<64x128xf32>,
    %c0_8 = arith.constant 0 : index
    %c0_9 = arith.constant 0 : index
    %c0_10 = arith.constant 0 : index
    %10 = vector.load %arg15[%c0_8, %c0_9, %c0_10] : memref<2x8x32xf32, #tpu.memory_space<vmem>>, vector<1x8x32xf32>
    %11 = vector.shape_cast %10 : vector<1x8x32xf32> to vector<8x32xf32>
    %c0_11 = arith.constant 0 : index
    %c0_12 = arith.constant 0 : index
    %c0_13 = arith.constant 0 : index
    %12 = vector.load %arg16[%c0_11, %c0_12, %c0_13] : memref<2x8x32xf32, #tpu.memory_space<vmem>>, vector<1x8x32xf32>
    %13 = vector.shape_cast %12 : vector<1x8x32xf32> to vector<8x32xf32>
    %c0_i32_14 = arith.constant 0 : i32
    %c8_i32 = arith.constant 8 : i32
    %14 = arith.muli %c0_i32_14, %c8_i32 : i32
    %15 = tpu.assume_multiple %14, 8 : i32
    %16 = arith.index_cast %15 : i32 to index
    %c0_15 = arith.constant 0 : index
    %17 = vector.load %arg17[%16, %c0_15] : memref<64x128xf32, #tpu.memory_space<vmem>>, vector<8x128xf32>
    %18 = arith.truncf %11 : vector<8x32xf32> to vector<8x32xbf16>
    %c0_16 = arith.constant 0 : index
    %c0_17 = arith.constant 0 : index
    %19 = vector.load %arg3[%c0_16, %c0_17] : memref<32x128xbf16, #tpu.memory_space<vmem>>, vector<32x128xbf16>
    %cst_18 = arith.constant dense<0.000000e+00> : vector<8x128xf32>
    %20 = tpu.matmul %18, %19, %cst_18 {dimension_numbers = #tpu.dot_dimension_numbers<[1], [0], [0], [1], [0, 0, 1, 1], [], []>} : vector<8x32xbf16>, vector<32x128xbf16>, vector<8x128xf32> -> vector<8x128xf32>
    %21 = arith.addf %17, %20 : vector<8x128xf32>
    %22 = arith.negf %21 : vector<8x128xf32>
    %23 = math.exp %22 : vector<8x128xf32>
    %cst_19 = arith.constant 1.000000e+00 : f32
    %24 = vector.broadcast %cst_19 : f32 to vector<8x128xf32>
    %25 = arith.addf %24, %23 : vector<8x128xf32>
    %26 = arith.divf %24, %25 : vector<8x128xf32>
    %27 = math.tanh %21 : vector<8x128xf32>
    %28 = vector.extract_strided_slice %26 {offsets = [0, 0], sizes = [8, 32], strides = [1, 1]} : vector<8x128xf32> to vector<8x32xf32>
    %29 = vector.extract_strided_slice %26 {offsets = [0, 32], sizes = [8, 32], strides = [1, 1]} : vector<8x128xf32> to vector<8x32xf32>
    %30 = vector.extract_strided_slice %27 {offsets = [0, 64], sizes = [8, 32], strides = [1, 1]} : vector<8x128xf32> to vector<8x32xf32>
    %31 = vector.extract_strided_slice %26 {offsets = [0, 96], sizes = [8, 32], strides = [1, 1]} : vector<8x128xf32> to vector<8x32xf32>
    %32 = arith.mulf %29, %13 : vector<8x32xf32>
    %33 = arith.mulf %28, %30 : vector<8x32xf32>
    %34 = arith.addf %32, %33 : vector<8x32xf32>
    %35 = math.tanh %34 : vector<8x32xf32>
    %36 = arith.mulf %31, %35 : vector<8x32xf32>
    %37 = arith.index_cast %15 : i32 to index
    %c0_20 = arith.constant 0 : index
    %38 = vector.load %arg18[%37, %c0_20] : memref<64x32xf32, #tpu.memory_space<vmem>>, vector<8x32xf32>
    tpu.vector_store %arg18[%37, %c0_20], %36 {strides = array<i32>} : memref<64x32xf32, #tpu.memory_space<vmem>>, vector<8x32xf32>,
    %c1_i32 = arith.constant 1 : i32
    %c8_i32_21 = arith.constant 8 : i32
    %39 = arith.muli %c1_i32, %c8_i32_21 : i32
    %40 = tpu.assume_multiple %39, 8 : i32
    %41 = arith.index_cast %40 : i32 to index
    %c0_22 = arith.constant 0 : index
    %42 = vector.load %arg17[%41, %c0_22] : memref<64x128xf32, #tpu.memory_space<vmem>>, vector<8x128xf32>
    %43 = arith.truncf %36 : vector<8x32xf32> to vector<8x32xbf16>
    %c0_23 = arith.constant 0 : index
    %c0_24 = arith.constant 0 : index
    %44 = vector.load %arg3[%c0_23, %c0_24] : memref<32x128xbf16, #tpu.memory_space<vmem>>, vector<32x128xbf16>
    %cst_25 = arith.constant dense<0.000000e+00> : vector<8x128xf32>
    %45 = tpu.matmul %43, %44, %cst_25 {dimension_numbers = #tpu.dot_dimension_numbers<[1], [0], [0], [1], [0, 0, 1, 1], [], []>} : vector<8x32xbf16>, vector<32x128xbf16>, vector<8x128xf32> -> vector<8x128xf32>
    %46 = arith.addf %42, %45 : vector<8x128xf32>
    %47 = arith.negf %46 : vector<8x128xf32>
    %48 = math.exp %47 : vector<8x128xf32>
    %cst_26 = arith.constant 1.000000e+00 : f32
    %49 = vector.broadcast %cst_26 : f32 to vector<8x128xf32>
    %50 = arith.addf %49, %48 : vector<8x128xf32>
    %51 = arith.divf %49, %50 : vector<8x128xf32>
    %52 = math.tanh %46 : vector<8x128xf32>
    %53 = vector.extract_strided_slice %51 {offsets = [0, 0], sizes = [8, 32], strides = [1, 1]} : vector<8x128xf32> to vector<8x32xf32>
    %54 = vector.extract_strided_slice %51 {offsets = [0, 32], sizes = [8, 32], strides = [1, 1]} : vector<8x128xf32> to vector<8x32xf32>
    %55 = vector.extract_strided_slice %52 {offsets = [0, 64], sizes = [8, 32], strides = [1, 1]} : vector<8x128xf32> to vector<8x32xf32>
    %56 = vector.extract_strided_slice %51 {offsets = [0, 96], sizes = [8, 32], strides = [1, 1]} : vector<8x128xf32> to vector<8x32xf32>
    %57 = arith.mulf %54, %34 : vector<8x32xf32>
    %58 = arith.mulf %53, %55 : vector<8x32xf32>
    %59 = arith.addf %57, %58 : vector<8x32xf32>
    %60 = math.tanh %59 : vector<8x32xf32>
    %61 = arith.mulf %56, %60 : vector<8x32xf32>
    %62 = arith.index_cast %40 : i32 to index
    %c0_27 = arith.constant 0 : index
    %63 = vector.load %arg18[%62, %c0_27] : memref<64x32xf32, #tpu.memory_space<vmem>>, vector<8x32xf32>
    tpu.vector_store %arg18[%62, %c0_27], %61 {strides = array<i32>} : memref<64x32xf32, #tpu.memory_space<vmem>>, vector<8x32xf32>,
    %c2_i32 = arith.constant 2 : i32
    %c8_i32_28 = arith.constant 8 : i32
    %64 = arith.muli %c2_i32, %c8_i32_28 : i32
    %65 = tpu.assume_multiple %64, 8 : i32
    %66 = arith.index_cast %65 : i32 to index
    %c0_29 = arith.constant 0 : index
    %67 = vector.load %arg17[%66, %c0_29] : memref<64x128xf32, #tpu.memory_space<vmem>>, vector<8x128xf32>
    %68 = arith.truncf %61 : vector<8x32xf32> to vector<8x32xbf16>
    %c0_30 = arith.constant 0 : index
    %c0_31 = arith.constant 0 : index
    %69 = vector.load %arg3[%c0_30, %c0_31] : memref<32x128xbf16, #tpu.memory_space<vmem>>, vector<32x128xbf16>
    %cst_32 = arith.constant dense<0.000000e+00> : vector<8x128xf32>
    %70 = tpu.matmul %68, %69, %cst_32 {dimension_numbers = #tpu.dot_dimension_numbers<[1], [0], [0], [1], [0, 0, 1, 1], [], []>} : vector<8x32xbf16>, vector<32x128xbf16>, vector<8x128xf32> -> vector<8x128xf32>
    %71 = arith.addf %67, %70 : vector<8x128xf32>
    %72 = arith.negf %71 : vector<8x128xf32>
    %73 = math.exp %72 : vector<8x128xf32>
    %cst_33 = arith.constant 1.000000e+00 : f32
    %74 = vector.broadcast %cst_33 : f32 to vector<8x128xf32>
    %75 = arith.addf %74, %73 : vector<8x128xf32>
    %76 = arith.divf %74, %75 : vector<8x128xf32>
    %77 = math.tanh %71 : vector<8x128xf32>
    %78 = vector.extract_strided_slice %76 {offsets = [0, 0], sizes = [8, 32], strides = [1, 1]} : vector<8x128xf32> to vector<8x32xf32>
    %79 = vector.extract_strided_slice %76 {offsets = [0, 32], sizes = [8, 32], strides = [1, 1]} : vector<8x128xf32> to vector<8x32xf32>
    %80 = vector.extract_strided_slice %77 {offsets = [0, 64], sizes = [8, 32], strides = [1, 1]} : vector<8x128xf32> to vector<8x32xf32>
    %81 = vector.extract_strided_slice %76 {offsets = [0, 96], sizes = [8, 32], strides = [1, 1]} : vector<8x128xf32> to vector<8x32xf32>
    %82 = arith.mulf %79, %59 : vector<8x32xf32>
    %83 = arith.mulf %78, %80 : vector<8x32xf32>
    %84 = arith.addf %82, %83 : vector<8x32xf32>
    %85 = math.tanh %84 : vector<8x32xf32>
    %86 = arith.mulf %81, %85 : vector<8x32xf32>
    %87 = arith.index_cast %65 : i32 to index
    %c0_34 = arith.constant 0 : index
    %88 = vector.load %arg18[%87, %c0_34] : memref<64x32xf32, #tpu.memory_space<vmem>>, vector<8x32xf32>
    tpu.vector_store %arg18[%87, %c0_34], %86 {strides = array<i32>} : memref<64x32xf32, #tpu.memory_space<vmem>>, vector<8x32xf32>,
    %c3_i32 = arith.constant 3 : i32
    %c8_i32_35 = arith.constant 8 : i32
    %89 = arith.muli %c3_i32, %c8_i32_35 : i32
    %90 = tpu.assume_multiple %89, 8 : i32
    %91 = arith.index_cast %90 : i32 to index
    %c0_36 = arith.constant 0 : index
    %92 = vector.load %arg17[%91, %c0_36] : memref<64x128xf32, #tpu.memory_space<vmem>>, vector<8x128xf32>
    %93 = arith.truncf %86 : vector<8x32xf32> to vector<8x32xbf16>
    %c0_37 = arith.constant 0 : index
    %c0_38 = arith.constant 0 : index
    %94 = vector.load %arg3[%c0_37, %c0_38] : memref<32x128xbf16, #tpu.memory_space<vmem>>, vector<32x128xbf16>
    %cst_39 = arith.constant dense<0.000000e+00> : vector<8x128xf32>
    %95 = tpu.matmul %93, %94, %cst_39 {dimension_numbers = #tpu.dot_dimension_numbers<[1], [0], [0], [1], [0, 0, 1, 1], [], []>} : vector<8x32xbf16>, vector<32x128xbf16>, vector<8x128xf32> -> vector<8x128xf32>
    %96 = arith.addf %92, %95 : vector<8x128xf32>
    %97 = arith.negf %96 : vector<8x128xf32>
    %98 = math.exp %97 : vector<8x128xf32>
    %cst_40 = arith.constant 1.000000e+00 : f32
    %99 = vector.broadcast %cst_40 : f32 to vector<8x128xf32>
    %100 = arith.addf %99, %98 : vector<8x128xf32>
    %101 = arith.divf %99, %100 : vector<8x128xf32>
    %102 = math.tanh %96 : vector<8x128xf32>
    %103 = vector.extract_strided_slice %101 {offsets = [0, 0], sizes = [8, 32], strides = [1, 1]} : vector<8x128xf32> to vector<8x32xf32>
    %104 = vector.extract_strided_slice %101 {offsets = [0, 32], sizes = [8, 32], strides = [1, 1]} : vector<8x128xf32> to vector<8x32xf32>
    %105 = vector.extract_strided_slice %102 {offsets = [0, 64], sizes = [8, 32], strides = [1, 1]} : vector<8x128xf32> to vector<8x32xf32>
    %106 = vector.extract_strided_slice %101 {offsets = [0, 96], sizes = [8, 32], strides = [1, 1]} : vector<8x128xf32> to vector<8x32xf32>
    %107 = arith.mulf %104, %84 : vector<8x32xf32>
    %108 = arith.mulf %103, %105 : vector<8x32xf32>
    %109 = arith.addf %107, %108 : vector<8x32xf32>
    %110 = math.tanh %109 : vector<8x32xf32>
    %111 = arith.mulf %106, %110 : vector<8x32xf32>
    %112 = arith.index_cast %90 : i32 to index
    %c0_41 = arith.constant 0 : index
    %113 = vector.load %arg18[%112, %c0_41] : memref<64x32xf32, #tpu.memory_space<vmem>>, vector<8x32xf32>
    tpu.vector_store %arg18[%112, %c0_41], %111 {strides = array<i32>} : memref<64x32xf32, #tpu.memory_space<vmem>>, vector<8x32xf32>,
    %c4_i32 = arith.constant 4 : i32
    %c8_i32_42 = arith.constant 8 : i32
    %114 = arith.muli %c4_i32, %c8_i32_42 : i32
    %115 = tpu.assume_multiple %114, 8 : i32
    %116 = arith.index_cast %115 : i32 to index
    %c0_43 = arith.constant 0 : index
    %117 = vector.load %arg17[%116, %c0_43] : memref<64x128xf32, #tpu.memory_space<vmem>>, vector<8x128xf32>
    %118 = arith.truncf %111 : vector<8x32xf32> to vector<8x32xbf16>
    %c0_44 = arith.constant 0 : index
    %c0_45 = arith.constant 0 : index
    %119 = vector.load %arg3[%c0_44, %c0_45] : memref<32x128xbf16, #tpu.memory_space<vmem>>, vector<32x128xbf16>
    %cst_46 = arith.constant dense<0.000000e+00> : vector<8x128xf32>
    %120 = tpu.matmul %118, %119, %cst_46 {dimension_numbers = #tpu.dot_dimension_numbers<[1], [0], [0], [1], [0, 0, 1, 1], [], []>} : vector<8x32xbf16>, vector<32x128xbf16>, vector<8x128xf32> -> vector<8x128xf32>
    %121 = arith.addf %117, %120 : vector<8x128xf32>
    %122 = arith.negf %121 : vector<8x128xf32>
    %123 = math.exp %122 : vector<8x128xf32>
    %cst_47 = arith.constant 1.000000e+00 : f32
    %124 = vector.broadcast %cst_47 : f32 to vector<8x128xf32>
    %125 = arith.addf %124, %123 : vector<8x128xf32>
    %126 = arith.divf %124, %125 : vector<8x128xf32>
    %127 = math.tanh %121 : vector<8x128xf32>
    %128 = vector.extract_strided_slice %126 {offsets = [0, 0], sizes = [8, 32], strides = [1, 1]} : vector<8x128xf32> to vector<8x32xf32>
    %129 = vector.extract_strided_slice %126 {offsets = [0, 32], sizes = [8, 32], strides = [1, 1]} : vector<8x128xf32> to vector<8x32xf32>
    %130 = vector.extract_strided_slice %127 {offsets = [0, 64], sizes = [8, 32], strides = [1, 1]} : vector<8x128xf32> to vector<8x32xf32>
    %131 = vector.extract_strided_slice %126 {offsets = [0, 96], sizes = [8, 32], strides = [1, 1]} : vector<8x128xf32> to vector<8x32xf32>
    %132 = arith.mulf %129, %109 : vector<8x32xf32>
    %133 = arith.mulf %128, %130 : vector<8x32xf32>
    %134 = arith.addf %132, %133 : vector<8x32xf32>
    %135 = math.tanh %134 : vector<8x32xf32>
    %136 = arith.mulf %131, %135 : vector<8x32xf32>
    %137 = arith.index_cast %115 : i32 to index
    %c0_48 = arith.constant 0 : index
    %138 = vector.load %arg18[%137, %c0_48] : memref<64x32xf32, #tpu.memory_space<vmem>>, vector<8x32xf32>
    tpu.vector_store %arg18[%137, %c0_48], %136 {strides = array<i32>} : memref<64x32xf32, #tpu.memory_space<vmem>>, vector<8x32xf32>,
    %c5_i32 = arith.constant 5 : i32
    %c8_i32_49 = arith.constant 8 : i32
    %139 = arith.muli %c5_i32, %c8_i32_49 : i32
    %140 = tpu.assume_multiple %139, 8 : i32
    %141 = arith.index_cast %140 : i32 to index
    %c0_50 = arith.constant 0 : index
    %142 = vector.load %arg17[%141, %c0_50] : memref<64x128xf32, #tpu.memory_space<vmem>>, vector<8x128xf32>
    %143 = arith.truncf %136 : vector<8x32xf32> to vector<8x32xbf16>
    %c0_51 = arith.constant 0 : index
    %c0_52 = arith.constant 0 : index
    %144 = vector.load %arg3[%c0_51, %c0_52] : memref<32x128xbf16, #tpu.memory_space<vmem>>, vector<32x128xbf16>
    %cst_53 = arith.constant dense<0.000000e+00> : vector<8x128xf32>
    %145 = tpu.matmul %143, %144, %cst_53 {dimension_numbers = #tpu.dot_dimension_numbers<[1], [0], [0], [1], [0, 0, 1, 1], [], []>} : vector<8x32xbf16>, vector<32x128xbf16>, vector<8x128xf32> -> vector<8x128xf32>
    %146 = arith.addf %142, %145 : vector<8x128xf32>
    %147 = arith.negf %146 : vector<8x128xf32>
    %148 = math.exp %147 : vector<8x128xf32>
    %cst_54 = arith.constant 1.000000e+00 : f32
    %149 = vector.broadcast %cst_54 : f32 to vector<8x128xf32>
    %150 = arith.addf %149, %148 : vector<8x128xf32>
    %151 = arith.divf %149, %150 : vector<8x128xf32>
    %152 = math.tanh %146 : vector<8x128xf32>
    %153 = vector.extract_strided_slice %151 {offsets = [0, 0], sizes = [8, 32], strides = [1, 1]} : vector<8x128xf32> to vector<8x32xf32>
    %154 = vector.extract_strided_slice %151 {offsets = [0, 32], sizes = [8, 32], strides = [1, 1]} : vector<8x128xf32> to vector<8x32xf32>
    %155 = vector.extract_strided_slice %152 {offsets = [0, 64], sizes = [8, 32], strides = [1, 1]} : vector<8x128xf32> to vector<8x32xf32>
    %156 = vector.extract_strided_slice %151 {offsets = [0, 96], sizes = [8, 32], strides = [1, 1]} : vector<8x128xf32> to vector<8x32xf32>
    %157 = arith.mulf %154, %134 : vector<8x32xf32>
    %158 = arith.mulf %153, %155 : vector<8x32xf32>
    %159 = arith.addf %157, %158 : vector<8x32xf32>
    %160 = math.tanh %159 : vector<8x32xf32>
    %161 = arith.mulf %156, %160 : vector<8x32xf32>
    %162 = arith.index_cast %140 : i32 to index
    %c0_55 = arith.constant 0 : index
    %163 = vector.load %arg18[%162, %c0_55] : memref<64x32xf32, #tpu.memory_space<vmem>>, vector<8x32xf32>
    tpu.vector_store %arg18[%162, %c0_55], %161 {strides = array<i32>} : memref<64x32xf32, #tpu.memory_space<vmem>>, vector<8x32xf32>,
    %c6_i32 = arith.constant 6 : i32
    %c8_i32_56 = arith.constant 8 : i32
    %164 = arith.muli %c6_i32, %c8_i32_56 : i32
    %165 = tpu.assume_multiple %164, 8 : i32
    %166 = arith.index_cast %165 : i32 to index
    %c0_57 = arith.constant 0 : index
    %167 = vector.load %arg17[%166, %c0_57] : memref<64x128xf32, #tpu.memory_space<vmem>>, vector<8x128xf32>
    %168 = arith.truncf %161 : vector<8x32xf32> to vector<8x32xbf16>
    %c0_58 = arith.constant 0 : index
    %c0_59 = arith.constant 0 : index
    %169 = vector.load %arg3[%c0_58, %c0_59] : memref<32x128xbf16, #tpu.memory_space<vmem>>, vector<32x128xbf16>
    %cst_60 = arith.constant dense<0.000000e+00> : vector<8x128xf32>
    %170 = tpu.matmul %168, %169, %cst_60 {dimension_numbers = #tpu.dot_dimension_numbers<[1], [0], [0], [1], [0, 0, 1, 1], [], []>} : vector<8x32xbf16>, vector<32x128xbf16>, vector<8x128xf32> -> vector<8x128xf32>
    %171 = arith.addf %167, %170 : vector<8x128xf32>
    %172 = arith.negf %171 : vector<8x128xf32>
    %173 = math.exp %172 : vector<8x128xf32>
    %cst_61 = arith.constant 1.000000e+00 : f32
    %174 = vector.broadcast %cst_61 : f32 to vector<8x128xf32>
    %175 = arith.addf %174, %173 : vector<8x128xf32>
    %176 = arith.divf %174, %175 : vector<8x128xf32>
    %177 = math.tanh %171 : vector<8x128xf32>
    %178 = vector.extract_strided_slice %176 {offsets = [0, 0], sizes = [8, 32], strides = [1, 1]} : vector<8x128xf32> to vector<8x32xf32>
    %179 = vector.extract_strided_slice %176 {offsets = [0, 32], sizes = [8, 32], strides = [1, 1]} : vector<8x128xf32> to vector<8x32xf32>
    %180 = vector.extract_strided_slice %177 {offsets = [0, 64], sizes = [8, 32], strides = [1, 1]} : vector<8x128xf32> to vector<8x32xf32>
    %181 = vector.extract_strided_slice %176 {offsets = [0, 96], sizes = [8, 32], strides = [1, 1]} : vector<8x128xf32> to vector<8x32xf32>
    %182 = arith.mulf %179, %159 : vector<8x32xf32>
    %183 = arith.mulf %178, %180 : vector<8x32xf32>
    %184 = arith.addf %182, %183 : vector<8x32xf32>
    %185 = math.tanh %184 : vector<8x32xf32>
    %186 = arith.mulf %181, %185 : vector<8x32xf32>
    %187 = arith.index_cast %165 : i32 to index
    %c0_62 = arith.constant 0 : index
    %188 = vector.load %arg18[%187, %c0_62] : memref<64x32xf32, #tpu.memory_space<vmem>>, vector<8x32xf32>
    tpu.vector_store %arg18[%187, %c0_62], %186 {strides = array<i32>} : memref<64x32xf32, #tpu.memory_space<vmem>>, vector<8x32xf32>,
    %c7_i32 = arith.constant 7 : i32
    %c8_i32_63 = arith.constant 8 : i32
    %189 = arith.muli %c7_i32, %c8_i32_63 : i32
    %190 = tpu.assume_multiple %189, 8 : i32
    %191 = arith.index_cast %190 : i32 to index
    %c0_64 = arith.constant 0 : index
    %192 = vector.load %arg17[%191, %c0_64] : memref<64x128xf32, #tpu.memory_space<vmem>>, vector<8x128xf32>
    %193 = arith.truncf %186 : vector<8x32xf32> to vector<8x32xbf16>
    %c0_65 = arith.constant 0 : index
    %c0_66 = arith.constant 0 : index
    %194 = vector.load %arg3[%c0_65, %c0_66] : memref<32x128xbf16, #tpu.memory_space<vmem>>, vector<32x128xbf16>
    %cst_67 = arith.constant dense<0.000000e+00> : vector<8x128xf32>
    %195 = tpu.matmul %193, %194, %cst_67 {dimension_numbers = #tpu.dot_dimension_numbers<[1], [0], [0], [1], [0, 0, 1, 1], [], []>} : vector<8x32xbf16>, vector<32x128xbf16>, vector<8x128xf32> -> vector<8x128xf32>
    %196 = arith.addf %192, %195 : vector<8x128xf32>
    %197 = arith.negf %196 : vector<8x128xf32>
    %198 = math.exp %197 : vector<8x128xf32>
    %cst_68 = arith.constant 1.000000e+00 : f32
    %199 = vector.broadcast %cst_68 : f32 to vector<8x128xf32>
    %200 = arith.addf %199, %198 : vector<8x128xf32>
    %201 = arith.divf %199, %200 : vector<8x128xf32>
    %202 = math.tanh %196 : vector<8x128xf32>
    %203 = vector.extract_strided_slice %201 {offsets = [0, 0], sizes = [8, 32], strides = [1, 1]} : vector<8x128xf32> to vector<8x32xf32>
    %204 = vector.extract_strided_slice %201 {offsets = [0, 32], sizes = [8, 32], strides = [1, 1]} : vector<8x128xf32> to vector<8x32xf32>
    %205 = vector.extract_strided_slice %202 {offsets = [0, 64], sizes = [8, 32], strides = [1, 1]} : vector<8x128xf32> to vector<8x32xf32>
    %206 = vector.extract_strided_slice %201 {offsets = [0, 96], sizes = [8, 32], strides = [1, 1]} : vector<8x128xf32> to vector<8x32xf32>
    %207 = arith.mulf %204, %184 : vector<8x32xf32>
    %208 = arith.mulf %203, %205 : vector<8x32xf32>
    %209 = arith.addf %207, %208 : vector<8x32xf32>
    %210 = math.tanh %209 : vector<8x32xf32>
    %211 = arith.mulf %206, %210 : vector<8x32xf32>
    %212 = arith.index_cast %190 : i32 to index
    %c0_69 = arith.constant 0 : index
    %213 = vector.load %arg18[%212, %c0_69] : memref<64x32xf32, #tpu.memory_space<vmem>>, vector<8x32xf32>
    tpu.vector_store %arg18[%212, %c0_69], %211 {strides = array<i32>} : memref<64x32xf32, #tpu.memory_space<vmem>>, vector<8x32xf32>,
    %c8_i32_70 = arith.constant 8 : i32
    %c0_71 = arith.constant 0 : index
    %c0_72 = arith.constant 0 : index
    %c0_73 = arith.constant 0 : index
    %214 = vector.load %arg15[%c0_71, %c0_72, %c0_73] : memref<2x8x32xf32, #tpu.memory_space<vmem>>, vector<1x8x32xf32>
    %215 = vector.shape_cast %214 : vector<1x8x32xf32> to vector<8x32xf32>
    %216 = vector.shape_cast %211 : vector<8x32xf32> to vector<1x8x32xf32>
    tpu.vector_store %arg15[%c0_71, %c0_72, %c0_73], %216 {strides = array<i32>} : memref<2x8x32xf32, #tpu.memory_space<vmem>>, vector<1x8x32xf32>,
    %c0_74 = arith.constant 0 : index
    %c0_75 = arith.constant 0 : index
    %c0_76 = arith.constant 0 : index
    %217 = vector.load %arg16[%c0_74, %c0_75, %c0_76] : memref<2x8x32xf32, #tpu.memory_space<vmem>>, vector<1x8x32xf32>
    %218 = vector.shape_cast %217 : vector<1x8x32xf32> to vector<8x32xf32>
    %219 = vector.shape_cast %209 : vector<8x32xf32> to vector<1x8x32xf32>
    tpu.vector_store %arg16[%c0_74, %c0_75, %c0_76], %219 {strides = array<i32>} : memref<2x8x32xf32, #tpu.memory_space<vmem>>, vector<1x8x32xf32>,
    %c0_77 = arith.constant 0 : index
    %c0_78 = arith.constant 0 : index
    %220 = vector.load %arg18[%c0_77, %c0_78] : memref<64x32xf32, #tpu.memory_space<vmem>>, vector<64x32xf32>
    %221 = arith.truncf %220 : vector<64x32xf32> to vector<64x32xbf16>
    %c0_79 = arith.constant 0 : index
    %c0_80 = arith.constant 0 : index
    %222 = vector.load %arg5[%c0_79, %c0_80] : memref<32x128xbf16, #tpu.memory_space<vmem>>, vector<32x128xbf16>
    %cst_81 = arith.constant dense<0.000000e+00> : vector<64x128xf32>
    %223 = tpu.matmul %221, %222, %cst_81 {dimension_numbers = #tpu.dot_dimension_numbers<[1], [0], [0], [1], [0, 0, 1, 1], [], []>} : vector<64x32xbf16>, vector<32x128xbf16>, vector<64x128xf32> -> vector<64x128xf32>
    %c0_82 = arith.constant 0 : index
    %c0_83 = arith.constant 0 : index
    %224 = vector.load %arg7[%c0_82, %c0_83] : memref<1x128xf32, #tpu.memory_space<vmem>>, vector<1x128xf32>
    %225 = vector.broadcast %224 : vector<1x128xf32> to vector<64x128xf32>
    %226 = arith.addf %223, %225 : vector<64x128xf32>
    %c0_84 = arith.constant 0 : index
    %c0_85 = arith.constant 0 : index
    %227 = vector.load %arg17[%c0_84, %c0_85] : memref<64x128xf32, #tpu.memory_space<vmem>>, vector<64x128xf32>
    tpu.vector_store %arg17[%c0_84, %c0_85], %226 {strides = array<i32>} : memref<64x128xf32, #tpu.memory_space<vmem>>, vector<64x128xf32>,
    %c1 = arith.constant 1 : index
    %c0_86 = arith.constant 0 : index
    %c0_87 = arith.constant 0 : index
    %228 = vector.load %arg15[%c1, %c0_86, %c0_87] : memref<2x8x32xf32, #tpu.memory_space<vmem>>, vector<1x8x32xf32>
    %229 = vector.shape_cast %228 : vector<1x8x32xf32> to vector<8x32xf32>
    %c1_88 = arith.constant 1 : index
    %c0_89 = arith.constant 0 : index
    %c0_90 = arith.constant 0 : index
    %230 = vector.load %arg16[%c1_88, %c0_89, %c0_90] : memref<2x8x32xf32, #tpu.memory_space<vmem>>, vector<1x8x32xf32>
    %231 = vector.shape_cast %230 : vector<1x8x32xf32> to vector<8x32xf32>
    %c0_i32_91 = arith.constant 0 : i32
    %c8_i32_92 = arith.constant 8 : i32
    %232 = arith.muli %c0_i32_91, %c8_i32_92 : i32
    %233 = tpu.assume_multiple %232, 8 : i32
    %234 = arith.index_cast %233 : i32 to index
    %c0_93 = arith.constant 0 : index
    %235 = vector.load %arg17[%234, %c0_93] : memref<64x128xf32, #tpu.memory_space<vmem>>, vector<8x128xf32>
    %236 = arith.truncf %229 : vector<8x32xf32> to vector<8x32xbf16>
    %c0_94 = arith.constant 0 : index
    %c0_95 = arith.constant 0 : index
    %237 = vector.load %arg6[%c0_94, %c0_95] : memref<32x128xbf16, #tpu.memory_space<vmem>>, vector<32x128xbf16>
    %cst_96 = arith.constant dense<0.000000e+00> : vector<8x128xf32>
    %238 = tpu.matmul %236, %237, %cst_96 {dimension_numbers = #tpu.dot_dimension_numbers<[1], [0], [0], [1], [0, 0, 1, 1], [], []>} : vector<8x32xbf16>, vector<32x128xbf16>, vector<8x128xf32> -> vector<8x128xf32>
    %239 = arith.addf %235, %238 : vector<8x128xf32>
    %240 = arith.negf %239 : vector<8x128xf32>
    %241 = math.exp %240 : vector<8x128xf32>
    %cst_97 = arith.constant 1.000000e+00 : f32
    %242 = vector.broadcast %cst_97 : f32 to vector<8x128xf32>
    %243 = arith.addf %242, %241 : vector<8x128xf32>
    %244 = arith.divf %242, %243 : vector<8x128xf32>
    %245 = math.tanh %239 : vector<8x128xf32>
    %246 = vector.extract_strided_slice %244 {offsets = [0, 0], sizes = [8, 32], strides = [1, 1]} : vector<8x128xf32> to vector<8x32xf32>
    %247 = vector.extract_strided_slice %244 {offsets = [0, 32], sizes = [8, 32], strides = [1, 1]} : vector<8x128xf32> to vector<8x32xf32>
    %248 = vector.extract_strided_slice %245 {offsets = [0, 64], sizes = [8, 32], strides = [1, 1]} : vector<8x128xf32> to vector<8x32xf32>
    %249 = vector.extract_strided_slice %244 {offsets = [0, 96], sizes = [8, 32], strides = [1, 1]} : vector<8x128xf32> to vector<8x32xf32>
    %250 = arith.mulf %247, %231 : vector<8x32xf32>
    %251 = arith.mulf %246, %248 : vector<8x32xf32>
    %252 = arith.addf %250, %251 : vector<8x32xf32>
    %253 = math.tanh %252 : vector<8x32xf32>
    %254 = arith.mulf %249, %253 : vector<8x32xf32>
    %c1_i32_98 = arith.constant 1 : i32
    %c8_i32_99 = arith.constant 8 : i32
    %255 = arith.muli %c1_i32_98, %c8_i32_99 : i32
    %256 = tpu.assume_multiple %255, 8 : i32
    %257 = arith.index_cast %256 : i32 to index
    %c0_100 = arith.constant 0 : index
    %258 = vector.load %arg17[%257, %c0_100] : memref<64x128xf32, #tpu.memory_space<vmem>>, vector<8x128xf32>
    %259 = arith.truncf %254 : vector<8x32xf32> to vector<8x32xbf16>
    %c0_101 = arith.constant 0 : index
    %c0_102 = arith.constant 0 : index
    %260 = vector.load %arg6[%c0_101, %c0_102] : memref<32x128xbf16, #tpu.memory_space<vmem>>, vector<32x128xbf16>
    %cst_103 = arith.constant dense<0.000000e+00> : vector<8x128xf32>
    %261 = tpu.matmul %259, %260, %cst_103 {dimension_numbers = #tpu.dot_dimension_numbers<[1], [0], [0], [1], [0, 0, 1, 1], [], []>} : vector<8x32xbf16>, vector<32x128xbf16>, vector<8x128xf32> -> vector<8x128xf32>
    %262 = arith.addf %258, %261 : vector<8x128xf32>
    %263 = arith.negf %262 : vector<8x128xf32>
    %264 = math.exp %263 : vector<8x128xf32>
    %cst_104 = arith.constant 1.000000e+00 : f32
    %265 = vector.broadcast %cst_104 : f32 to vector<8x128xf32>
    %266 = arith.addf %265, %264 : vector<8x128xf32>
    %267 = arith.divf %265, %266 : vector<8x128xf32>
    %268 = math.tanh %262 : vector<8x128xf32>
    %269 = vector.extract_strided_slice %267 {offsets = [0, 0], sizes = [8, 32], strides = [1, 1]} : vector<8x128xf32> to vector<8x32xf32>
    %270 = vector.extract_strided_slice %267 {offsets = [0, 32], sizes = [8, 32], strides = [1, 1]} : vector<8x128xf32> to vector<8x32xf32>
    %271 = vector.extract_strided_slice %268 {offsets = [0, 64], sizes = [8, 32], strides = [1, 1]} : vector<8x128xf32> to vector<8x32xf32>
    %272 = vector.extract_strided_slice %267 {offsets = [0, 96], sizes = [8, 32], strides = [1, 1]} : vector<8x128xf32> to vector<8x32xf32>
    %273 = arith.mulf %270, %252 : vector<8x32xf32>
    %274 = arith.mulf %269, %271 : vector<8x32xf32>
    %275 = arith.addf %273, %274 : vector<8x32xf32>
    %276 = math.tanh %275 : vector<8x32xf32>
    %277 = arith.mulf %272, %276 : vector<8x32xf32>
    %c2_i32_105 = arith.constant 2 : i32
    %c8_i32_106 = arith.constant 8 : i32
    %278 = arith.muli %c2_i32_105, %c8_i32_106 : i32
    %279 = tpu.assume_multiple %278, 8 : i32
    %280 = arith.index_cast %279 : i32 to index
    %c0_107 = arith.constant 0 : index
    %281 = vector.load %arg17[%280, %c0_107] : memref<64x128xf32, #tpu.memory_space<vmem>>, vector<8x128xf32>
    %282 = arith.truncf %277 : vector<8x32xf32> to vector<8x32xbf16>
    %c0_108 = arith.constant 0 : index
    %c0_109 = arith.constant 0 : index
    %283 = vector.load %arg6[%c0_108, %c0_109] : memref<32x128xbf16, #tpu.memory_space<vmem>>, vector<32x128xbf16>
    %cst_110 = arith.constant dense<0.000000e+00> : vector<8x128xf32>
    %284 = tpu.matmul %282, %283, %cst_110 {dimension_numbers = #tpu.dot_dimension_numbers<[1], [0], [0], [1], [0, 0, 1, 1], [], []>} : vector<8x32xbf16>, vector<32x128xbf16>, vector<8x128xf32> -> vector<8x128xf32>
    %285 = arith.addf %281, %284 : vector<8x128xf32>
    %286 = arith.negf %285 : vector<8x128xf32>
    %287 = math.exp %286 : vector<8x128xf32>
    %cst_111 = arith.constant 1.000000e+00 : f32
    %288 = vector.broadcast %cst_111 : f32 to vector<8x128xf32>
    %289 = arith.addf %288, %287 : vector<8x128xf32>
    %290 = arith.divf %288, %289 : vector<8x128xf32>
    %291 = math.tanh %285 : vector<8x128xf32>
    %292 = vector.extract_strided_slice %290 {offsets = [0, 0], sizes = [8, 32], strides = [1, 1]} : vector<8x128xf32> to vector<8x32xf32>
    %293 = vector.extract_strided_slice %290 {offsets = [0, 32], sizes = [8, 32], strides = [1, 1]} : vector<8x128xf32> to vector<8x32xf32>
    %294 = vector.extract_strided_slice %291 {offsets = [0, 64], sizes = [8, 32], strides = [1, 1]} : vector<8x128xf32> to vector<8x32xf32>
    %295 = vector.extract_strided_slice %290 {offsets = [0, 96], sizes = [8, 32], strides = [1, 1]} : vector<8x128xf32> to vector<8x32xf32>
    %296 = arith.mulf %293, %275 : vector<8x32xf32>
    %297 = arith.mulf %292, %294 : vector<8x32xf32>
    %298 = arith.addf %296, %297 : vector<8x32xf32>
    %299 = math.tanh %298 : vector<8x32xf32>
    %300 = arith.mulf %295, %299 : vector<8x32xf32>
    %c3_i32_112 = arith.constant 3 : i32
    %c8_i32_113 = arith.constant 8 : i32
    %301 = arith.muli %c3_i32_112, %c8_i32_113 : i32
    %302 = tpu.assume_multiple %301, 8 : i32
    %303 = arith.index_cast %302 : i32 to index
    %c0_114 = arith.constant 0 : index
    %304 = vector.load %arg17[%303, %c0_114] : memref<64x128xf32, #tpu.memory_space<vmem>>, vector<8x128xf32>
    %305 = arith.truncf %300 : vector<8x32xf32> to vector<8x32xbf16>
    %c0_115 = arith.constant 0 : index
    %c0_116 = arith.constant 0 : index
    %306 = vector.load %arg6[%c0_115, %c0_116] : memref<32x128xbf16, #tpu.memory_space<vmem>>, vector<32x128xbf16>
    %cst_117 = arith.constant dense<0.000000e+00> : vector<8x128xf32>
    %307 = tpu.matmul %305, %306, %cst_117 {dimension_numbers = #tpu.dot_dimension_numbers<[1], [0], [0], [1], [0, 0, 1, 1], [], []>} : vector<8x32xbf16>, vector<32x128xbf16>, vector<8x128xf32> -> vector<8x128xf32>
    %308 = arith.addf %304, %307 : vector<8x128xf32>
    %309 = arith.negf %308 : vector<8x128xf32>
    %310 = math.exp %309 : vector<8x128xf32>
    %cst_118 = arith.constant 1.000000e+00 : f32
    %311 = vector.broadcast %cst_118 : f32 to vector<8x128xf32>
    %312 = arith.addf %311, %310 : vector<8x128xf32>
    %313 = arith.divf %311, %312 : vector<8x128xf32>
    %314 = math.tanh %308 : vector<8x128xf32>
    %315 = vector.extract_strided_slice %313 {offsets = [0, 0], sizes = [8, 32], strides = [1, 1]} : vector<8x128xf32> to vector<8x32xf32>
    %316 = vector.extract_strided_slice %313 {offsets = [0, 32], sizes = [8, 32], strides = [1, 1]} : vector<8x128xf32> to vector<8x32xf32>
    %317 = vector.extract_strided_slice %314 {offsets = [0, 64], sizes = [8, 32], strides = [1, 1]} : vector<8x128xf32> to vector<8x32xf32>
    %318 = vector.extract_strided_slice %313 {offsets = [0, 96], sizes = [8, 32], strides = [1, 1]} : vector<8x128xf32> to vector<8x32xf32>
    %319 = arith.mulf %316, %298 : vector<8x32xf32>
    %320 = arith.mulf %315, %317 : vector<8x32xf32>
    %321 = arith.addf %319, %320 : vector<8x32xf32>
    %322 = math.tanh %321 : vector<8x32xf32>
    %323 = arith.mulf %318, %322 : vector<8x32xf32>
    %c4_i32_119 = arith.constant 4 : i32
    %c8_i32_120 = arith.constant 8 : i32
    %324 = arith.muli %c4_i32_119, %c8_i32_120 : i32
    %325 = tpu.assume_multiple %324, 8 : i32
    %326 = arith.index_cast %325 : i32 to index
    %c0_121 = arith.constant 0 : index
    %327 = vector.load %arg17[%326, %c0_121] : memref<64x128xf32, #tpu.memory_space<vmem>>, vector<8x128xf32>
    %328 = arith.truncf %323 : vector<8x32xf32> to vector<8x32xbf16>
    %c0_122 = arith.constant 0 : index
    %c0_123 = arith.constant 0 : index
    %329 = vector.load %arg6[%c0_122, %c0_123] : memref<32x128xbf16, #tpu.memory_space<vmem>>, vector<32x128xbf16>
    %cst_124 = arith.constant dense<0.000000e+00> : vector<8x128xf32>
    %330 = tpu.matmul %328, %329, %cst_124 {dimension_numbers = #tpu.dot_dimension_numbers<[1], [0], [0], [1], [0, 0, 1, 1], [], []>} : vector<8x32xbf16>, vector<32x128xbf16>, vector<8x128xf32> -> vector<8x128xf32>
    %331 = arith.addf %327, %330 : vector<8x128xf32>
    %332 = arith.negf %331 : vector<8x128xf32>
    %333 = math.exp %332 : vector<8x128xf32>
    %cst_125 = arith.constant 1.000000e+00 : f32
    %334 = vector.broadcast %cst_125 : f32 to vector<8x128xf32>
    %335 = arith.addf %334, %333 : vector<8x128xf32>
    %336 = arith.divf %334, %335 : vector<8x128xf32>
    %337 = math.tanh %331 : vector<8x128xf32>
    %338 = vector.extract_strided_slice %336 {offsets = [0, 0], sizes = [8, 32], strides = [1, 1]} : vector<8x128xf32> to vector<8x32xf32>
    %339 = vector.extract_strided_slice %336 {offsets = [0, 32], sizes = [8, 32], strides = [1, 1]} : vector<8x128xf32> to vector<8x32xf32>
    %340 = vector.extract_strided_slice %337 {offsets = [0, 64], sizes = [8, 32], strides = [1, 1]} : vector<8x128xf32> to vector<8x32xf32>
    %341 = vector.extract_strided_slice %336 {offsets = [0, 96], sizes = [8, 32], strides = [1, 1]} : vector<8x128xf32> to vector<8x32xf32>
    %342 = arith.mulf %339, %321 : vector<8x32xf32>
    %343 = arith.mulf %338, %340 : vector<8x32xf32>
    %344 = arith.addf %342, %343 : vector<8x32xf32>
    %345 = math.tanh %344 : vector<8x32xf32>
    %346 = arith.mulf %341, %345 : vector<8x32xf32>
    %c5_i32_126 = arith.constant 5 : i32
    %c8_i32_127 = arith.constant 8 : i32
    %347 = arith.muli %c5_i32_126, %c8_i32_127 : i32
    %348 = tpu.assume_multiple %347, 8 : i32
    %349 = arith.index_cast %348 : i32 to index
    %c0_128 = arith.constant 0 : index
    %350 = vector.load %arg17[%349, %c0_128] : memref<64x128xf32, #tpu.memory_space<vmem>>, vector<8x128xf32>
    %351 = arith.truncf %346 : vector<8x32xf32> to vector<8x32xbf16>
    %c0_129 = arith.constant 0 : index
    %c0_130 = arith.constant 0 : index
    %352 = vector.load %arg6[%c0_129, %c0_130] : memref<32x128xbf16, #tpu.memory_space<vmem>>, vector<32x128xbf16>
    %cst_131 = arith.constant dense<0.000000e+00> : vector<8x128xf32>
    %353 = tpu.matmul %351, %352, %cst_131 {dimension_numbers = #tpu.dot_dimension_numbers<[1], [0], [0], [1], [0, 0, 1, 1], [], []>} : vector<8x32xbf16>, vector<32x128xbf16>, vector<8x128xf32> -> vector<8x128xf32>
    %354 = arith.addf %350, %353 : vector<8x128xf32>
    %355 = arith.negf %354 : vector<8x128xf32>
    %356 = math.exp %355 : vector<8x128xf32>
    %cst_132 = arith.constant 1.000000e+00 : f32
    %357 = vector.broadcast %cst_132 : f32 to vector<8x128xf32>
    %358 = arith.addf %357, %356 : vector<8x128xf32>
    %359 = arith.divf %357, %358 : vector<8x128xf32>
    %360 = math.tanh %354 : vector<8x128xf32>
    %361 = vector.extract_strided_slice %359 {offsets = [0, 0], sizes = [8, 32], strides = [1, 1]} : vector<8x128xf32> to vector<8x32xf32>
    %362 = vector.extract_strided_slice %359 {offsets = [0, 32], sizes = [8, 32], strides = [1, 1]} : vector<8x128xf32> to vector<8x32xf32>
    %363 = vector.extract_strided_slice %360 {offsets = [0, 64], sizes = [8, 32], strides = [1, 1]} : vector<8x128xf32> to vector<8x32xf32>
    %364 = vector.extract_strided_slice %359 {offsets = [0, 96], sizes = [8, 32], strides = [1, 1]} : vector<8x128xf32> to vector<8x32xf32>
    %365 = arith.mulf %362, %344 : vector<8x32xf32>
    %366 = arith.mulf %361, %363 : vector<8x32xf32>
    %367 = arith.addf %365, %366 : vector<8x32xf32>
    %368 = math.tanh %367 : vector<8x32xf32>
    %369 = arith.mulf %364, %368 : vector<8x32xf32>
    %c6_i32_133 = arith.constant 6 : i32
    %c8_i32_134 = arith.constant 8 : i32
    %370 = arith.muli %c6_i32_133, %c8_i32_134 : i32
    %371 = tpu.assume_multiple %370, 8 : i32
    %372 = arith.index_cast %371 : i32 to index
    %c0_135 = arith.constant 0 : index
    %373 = vector.load %arg17[%372, %c0_135] : memref<64x128xf32, #tpu.memory_space<vmem>>, vector<8x128xf32>
    %374 = arith.truncf %369 : vector<8x32xf32> to vector<8x32xbf16>
    %c0_136 = arith.constant 0 : index
    %c0_137 = arith.constant 0 : index
    %375 = vector.load %arg6[%c0_136, %c0_137] : memref<32x128xbf16, #tpu.memory_space<vmem>>, vector<32x128xbf16>
    %cst_138 = arith.constant dense<0.000000e+00> : vector<8x128xf32>
    %376 = tpu.matmul %374, %375, %cst_138 {dimension_numbers = #tpu.dot_dimension_numbers<[1], [0], [0], [1], [0, 0, 1, 1], [], []>} : vector<8x32xbf16>, vector<32x128xbf16>, vector<8x128xf32> -> vector<8x128xf32>
    %377 = arith.addf %373, %376 : vector<8x128xf32>
    %378 = arith.negf %377 : vector<8x128xf32>
    %379 = math.exp %378 : vector<8x128xf32>
    %cst_139 = arith.constant 1.000000e+00 : f32
    %380 = vector.broadcast %cst_139 : f32 to vector<8x128xf32>
    %381 = arith.addf %380, %379 : vector<8x128xf32>
    %382 = arith.divf %380, %381 : vector<8x128xf32>
    %383 = math.tanh %377 : vector<8x128xf32>
    %384 = vector.extract_strided_slice %382 {offsets = [0, 0], sizes = [8, 32], strides = [1, 1]} : vector<8x128xf32> to vector<8x32xf32>
    %385 = vector.extract_strided_slice %382 {offsets = [0, 32], sizes = [8, 32], strides = [1, 1]} : vector<8x128xf32> to vector<8x32xf32>
    %386 = vector.extract_strided_slice %383 {offsets = [0, 64], sizes = [8, 32], strides = [1, 1]} : vector<8x128xf32> to vector<8x32xf32>
    %387 = vector.extract_strided_slice %382 {offsets = [0, 96], sizes = [8, 32], strides = [1, 1]} : vector<8x128xf32> to vector<8x32xf32>
    %388 = arith.mulf %385, %367 : vector<8x32xf32>
    %389 = arith.mulf %384, %386 : vector<8x32xf32>
    %390 = arith.addf %388, %389 : vector<8x32xf32>
    %391 = math.tanh %390 : vector<8x32xf32>
    %392 = arith.mulf %387, %391 : vector<8x32xf32>
    %c7_i32_140 = arith.constant 7 : i32
    %c8_i32_141 = arith.constant 8 : i32
    %393 = arith.muli %c7_i32_140, %c8_i32_141 : i32
    %394 = tpu.assume_multiple %393, 8 : i32
    %395 = arith.index_cast %394 : i32 to index
    %c0_142 = arith.constant 0 : index
    %396 = vector.load %arg17[%395, %c0_142] : memref<64x128xf32, #tpu.memory_space<vmem>>, vector<8x128xf32>
    %397 = arith.truncf %392 : vector<8x32xf32> to vector<8x32xbf16>
    %c0_143 = arith.constant 0 : index
    %c0_144 = arith.constant 0 : index
    %398 = vector.load %arg6[%c0_143, %c0_144] : memref<32x128xbf16, #tpu.memory_space<vmem>>, vector<32x128xbf16>
    %cst_145 = arith.constant dense<0.000000e+00> : vector<8x128xf32>
    %399 = tpu.matmul %397, %398, %cst_145 {dimension_numbers = #tpu.dot_dimension_numbers<[1], [0], [0], [1], [0, 0, 1, 1], [], []>} : vector<8x32xbf16>, vector<32x128xbf16>, vector<8x128xf32> -> vector<8x128xf32>
    %400 = arith.addf %396, %399 : vector<8x128xf32>
    %401 = arith.negf %400 : vector<8x128xf32>
    %402 = math.exp %401 : vector<8x128xf32>
    %cst_146 = arith.constant 1.000000e+00 : f32
    %403 = vector.broadcast %cst_146 : f32 to vector<8x128xf32>
    %404 = arith.addf %403, %402 : vector<8x128xf32>
    %405 = arith.divf %403, %404 : vector<8x128xf32>
    %406 = math.tanh %400 : vector<8x128xf32>
    %407 = vector.extract_strided_slice %405 {offsets = [0, 0], sizes = [8, 32], strides = [1, 1]} : vector<8x128xf32> to vector<8x32xf32>
    %408 = vector.extract_strided_slice %405 {offsets = [0, 32], sizes = [8, 32], strides = [1, 1]} : vector<8x128xf32> to vector<8x32xf32>
    %409 = vector.extract_strided_slice %406 {offsets = [0, 64], sizes = [8, 32], strides = [1, 1]} : vector<8x128xf32> to vector<8x32xf32>
    %410 = vector.extract_strided_slice %405 {offsets = [0, 96], sizes = [8, 32], strides = [1, 1]} : vector<8x128xf32> to vector<8x32xf32>
    %411 = arith.mulf %408, %390 : vector<8x32xf32>
    %412 = arith.mulf %407, %409 : vector<8x32xf32>
    %413 = arith.addf %411, %412 : vector<8x32xf32>
    %414 = math.tanh %413 : vector<8x32xf32>
    %415 = arith.mulf %410, %414 : vector<8x32xf32>
    %c8_i32_147 = arith.constant 8 : i32
    %c1_148 = arith.constant 1 : index
    %c0_149 = arith.constant 0 : index
    %c0_150 = arith.constant 0 : index
    %416 = vector.load %arg15[%c1_148, %c0_149, %c0_150] : memref<2x8x32xf32, #tpu.memory_space<vmem>>, vector<1x8x32xf32>
    %417 = vector.shape_cast %416 : vector<1x8x32xf32> to vector<8x32xf32>
    %418 = vector.shape_cast %415 : vector<8x32xf32> to vector<1x8x32xf32>
    tpu.vector_store %arg15[%c1_148, %c0_149, %c0_150], %418 {strides = array<i32>} : memref<2x8x32xf32, #tpu.memory_space<vmem>>, vector<1x8x32xf32>,
    %c1_151 = arith.constant 1 : index
    %c0_152 = arith.constant 0 : index
    %c0_153 = arith.constant 0 : index
    %419 = vector.load %arg16[%c1_151, %c0_152, %c0_153] : memref<2x8x32xf32, #tpu.memory_space<vmem>>, vector<1x8x32xf32>
    %420 = vector.shape_cast %419 : vector<1x8x32xf32> to vector<8x32xf32>
    %421 = vector.shape_cast %413 : vector<8x32xf32> to vector<1x8x32xf32>
    tpu.vector_store %arg16[%c1_151, %c0_152, %c0_153], %421 {strides = array<i32>} : memref<2x8x32xf32, #tpu.memory_space<vmem>>, vector<1x8x32xf32>,
    %c0_i32_154 = arith.constant 0 : i32
    %422 = arith.cmpi eq, %arg0, %c0_i32_154 : i32
    %423 = arith.extui %422 : i1 to i32
    %c0_i32_155 = arith.constant 0 : i32
    %424 = arith.cmpi ne, %423, %c0_i32_155 : i32
    scf.if %424 {
      %c0_156 = arith.constant 0 : index
      %c0_157 = arith.constant 0 : index
      %c0_158 = arith.constant 0 : index
      %425 = vector.load %arg15[%c0_156, %c0_157, %c0_158] : memref<2x8x32xf32, #tpu.memory_space<vmem>>, vector<2x8x32xf32>
      %426 = vector.shape_cast %425 : vector<2x8x32xf32> to vector<16x32xf32>
      %427 = arith.truncf %426 : vector<16x32xf32> to vector<16x32xbf16>
      %c0_159 = arith.constant 0 : index
      %c0_160 = arith.constant 0 : index
      %428 = vector.load %arg8[%c0_159, %c0_160] : memref<32x512xbf16, #tpu.memory_space<vmem>>, vector<32x512xbf16>
      %cst_161 = arith.constant dense<0.000000e+00> : vector<16x512xf32>
      %429 = tpu.matmul %427, %428, %cst_161 {dimension_numbers = #tpu.dot_dimension_numbers<[1], [0], [0], [1], [0, 0, 1, 1], [], []>} : vector<16x32xbf16>, vector<32x512xbf16>, vector<16x512xf32> -> vector<16x512xf32>
      %c0_162 = arith.constant 0 : index
      %c0_163 = arith.constant 0 : index
      %430 = vector.load %arg9[%c0_162, %c0_163] : memref<1x512xf32, #tpu.memory_space<vmem>>, vector<1x512xf32>
      %431 = vector.broadcast %430 : vector<1x512xf32> to vector<16x512xf32>
      %432 = arith.addf %429, %431 : vector<16x512xf32>
      %cst_164 = arith.constant 0.000000e+00 : f32
      %433 = vector.broadcast %cst_164 : f32 to vector<16x512xf32>
      %434 = arith.maximumf %432, %433 : vector<16x512xf32>
      %435 = arith.truncf %434 : vector<16x512xf32> to vector<16x512xbf16>
      %c0_165 = arith.constant 0 : index
      %c0_166 = arith.constant 0 : index
      %436 = vector.load %arg10[%c0_165, %c0_166] : memref<512x256xbf16, #tpu.memory_space<vmem>>, vector<512x256xbf16>
      %cst_167 = arith.constant dense<0.000000e+00> : vector<16x256xf32>
      %437 = tpu.matmul %435, %436, %cst_167 {dimension_numbers = #tpu.dot_dimension_numbers<[1], [0], [0], [1], [0, 0, 1, 1], [], []>} : vector<16x512xbf16>, vector<512x256xbf16>, vector<16x256xf32> -> vector<16x256xf32>
      %c0_168 = arith.constant 0 : index
      %c0_169 = arith.constant 0 : index
      %438 = vector.load %arg11[%c0_168, %c0_169] : memref<1x256xf32, #tpu.memory_space<vmem>>, vector<1x256xf32>
      %439 = vector.broadcast %438 : vector<1x256xf32> to vector<16x256xf32>
      %440 = arith.addf %437, %439 : vector<16x256xf32>
      %cst_170 = arith.constant 0.000000e+00 : f32
      %441 = vector.broadcast %cst_170 : f32 to vector<16x256xf32>
      %442 = arith.maximumf %440, %441 : vector<16x256xf32>
      %443 = arith.truncf %442 : vector<16x256xf32> to vector<16x256xbf16>
      %c0_171 = arith.constant 0 : index
      %c0_172 = arith.constant 0 : index
      %444 = vector.load %arg12[%c0_171, %c0_172] : memref<256x128xbf16, #tpu.memory_space<vmem>>, vector<256x128xbf16>
      %cst_173 = arith.constant dense<0.000000e+00> : vector<16x128xf32>
      %445 = tpu.matmul %443, %444, %cst_173 {dimension_numbers = #tpu.dot_dimension_numbers<[1], [0], [0], [1], [0, 0, 1, 1], [], []>} : vector<16x256xbf16>, vector<256x128xbf16>, vector<16x128xf32> -> vector<16x128xf32>
      %c0_174 = arith.constant 0 : index
      %c0_175 = arith.constant 0 : index
      %446 = vector.load %arg13[%c0_174, %c0_175] : memref<1x128xf32, #tpu.memory_space<vmem>>, vector<1x128xf32>
      %447 = vector.broadcast %446 : vector<1x128xf32> to vector<16x128xf32>
      %448 = arith.addf %445, %447 : vector<16x128xf32>
      %c0_176 = arith.constant 0 : index
      %c0_177 = arith.constant 0 : index
      %449 = vector.load %arg14[%c0_176, %c0_177] : memref<16x128xf32, #tpu.memory_space<vmem>>, vector<16x128xf32>
      tpu.vector_store %arg14[%c0_176, %c0_177], %448 {strides = array<i32>} : memref<16x128xf32, #tpu.memory_space<vmem>>, vector<16x128xf32>,
    } else {
    }
    return
  }
  func.func @transform_0(%arg0: i32) -> (i32, i32) {
    %c0_i32 = arith.constant 0 : i32
    %c0_i32_0 = arith.constant 0 : i32
    return %arg0, %c0_i32 : i32, i32
  }
  func.func @transform_1(%arg0: i32) -> (i32, i32) {
    %c0_i32 = arith.constant 0 : i32
    %c0_i32_0 = arith.constant 0 : i32
    %c0_i32_1 = arith.constant 0 : i32
    return %c0_i32, %c0_i32_0 : i32, i32
  }
  func.func @transform_2(%arg0: i32) -> (i32, i32) {
    %c0_i32 = arith.constant 0 : i32
    %c0_i32_0 = arith.constant 0 : i32
    %c0_i32_1 = arith.constant 0 : i32
    return %c0_i32, %c0_i32_0 : i32, i32
  }
  func.func @transform_3(%arg0: i32) -> (i32, i32) {
    %c0_i32 = arith.constant 0 : i32
    %c0_i32_0 = arith.constant 0 : i32
    %c0_i32_1 = arith.constant 0 : i32
    return %c0_i32, %c0_i32_0 : i32, i32
  }
  func.func @transform_4(%arg0: i32) -> (i32, i32) {
    %c0_i32 = arith.constant 0 : i32
    %c0_i32_0 = arith.constant 0 : i32
    %c0_i32_1 = arith.constant 0 : i32
    return %c0_i32, %c0_i32_0 : i32, i32
  }
  func.func @transform_5(%arg0: i32) -> (i32, i32) {
    %c0_i32 = arith.constant 0 : i32
    %c0_i32_0 = arith.constant 0 : i32
    %c0_i32_1 = arith.constant 0 : i32
    return %c0_i32, %c0_i32_0 : i32, i32
  }
  func.func @transform_6(%arg0: i32) -> (i32, i32) {
    %c0_i32 = arith.constant 0 : i32
    %c0_i32_0 = arith.constant 0 : i32
    %c0_i32_1 = arith.constant 0 : i32
    return %c0_i32, %c0_i32_0 : i32, i32
  }
  func.func @transform_7(%arg0: i32) -> (i32, i32) {
    %c0_i32 = arith.constant 0 : i32
    %c0_i32_0 = arith.constant 0 : i32
    %c0_i32_1 = arith.constant 0 : i32
    return %c0_i32, %c0_i32_0 : i32, i32
  }
  func.func @transform_8(%arg0: i32) -> (i32, i32) {
    %c0_i32 = arith.constant 0 : i32
    %c0_i32_0 = arith.constant 0 : i32
    %c0_i32_1 = arith.constant 0 : i32
    return %c0_i32, %c0_i32_0 : i32, i32
  }
  func.func @transform_9(%arg0: i32) -> (i32, i32) {
    %c0_i32 = arith.constant 0 : i32
    %c0_i32_0 = arith.constant 0 : i32
    %c0_i32_1 = arith.constant 0 : i32
    return %c0_i32, %c0_i32_0 : i32, i32
  }
  func.func @transform_10(%arg0: i32) -> (i32, i32) {
    %c0_i32 = arith.constant 0 : i32
    %c0_i32_0 = arith.constant 0 : i32
    %c0_i32_1 = arith.constant 0 : i32
    return %c0_i32, %c0_i32_0 : i32, i32
  }
  func.func @transform_11(%arg0: i32) -> (i32, i32) {
    %c0_i32 = arith.constant 0 : i32
    %c0_i32_0 = arith.constant 0 : i32
    %c0_i32_1 = arith.constant 0 : i32
    return %c0_i32, %c0_i32_0 : i32, i32
  }
  func.func @transform_12(%arg0: i32) -> (i32, i32) {
    %c0_i32 = arith.constant 0 : i32
    %c0_i32_0 = arith.constant 0 : i32
    %c0_i32_1 = arith.constant 0 : i32
    return %c0_i32, %c0_i32_0 : i32, i32
  }
  func.func @transform_13(%arg0: i32) -> (i32, i32) {
    %c0_i32 = arith.constant 0 : i32
    %c0_i32_0 = arith.constant 0 : i32
    %c0_i32_1 = arith.constant 0 : i32
    return %c0_i32, %c0_i32_0 : i32, i32
  }
}

</mosaic_0001>

<bundles_post_ra>
// kernel: tpu_custom_call.1
= control target key start
LH: loop header
LB: loop body
LE: loop exit
PB: predicated region body
PF: predicated region fallthrough
CT: control target
= control target key end

     0   :  { %18 = vsyncpa [#allocation7], 0  ;;  %s4279_s0 = inlined_call_operand.hbm [shape: bf16[64,128], index: 0, kind: input, shape index: {}]   ;;  %s4280_s1 = inlined_call_operand.hbm [shape: bf16[128,128], index: 1, kind: input, shape index: {}]   ;;  %s4281_s2 = inlined_call_operand.hbm [shape: bf16[32,128], index: 2, kind: input, shape index: {}]   ;;  %s4282_s3 = inlined_call_operand.hbm [shape: f32[1,128], index: 3, kind: input, shape index: {}]   ;;  %s4283_s4 = inlined_call_operand.hbm [shape: bf16[32,128], index: 4, kind: input, shape index: {}]   ;;  %s4284_s5 = inlined_call_operand.vmem [shape: bf16[32,128], index: 5, kind: input, shape index: {}]   ;;  %s4285_s6 = inlined_call_operand.hbm [shape: f32[1,128], index: 6, kind: input, shape index: {}]   ;;  %s4286_s7 = inlined_call_operand.hbm [shape: bf16[32,512], index: 7, kind: input, shape index: {}]   ;;  %s4287_s8 = inlined_call_operand.vmem [shape: f32[1,512], index: 8, kind: input, shape index: {}]   ;;  %s4288_s9 = inlined_call_operand.hbm [shape: bf16[512,256], index: 9, kind: input, shape index: {}]   ;;  %s4289_s10 = inlined_call_operand.vmem [shape: f32[1,256], index: 10, kind: input, shape index: {}]   ;;  %s4290_s11 = inlined_call_operand.hbm [shape: bf16[256,128], index: 11, kind: input, shape index: {}]   ;;  %s4291_s12 = inlined_call_operand.vmem [shape: f32[1,128], index: 12, kind: input, shape index: {}]   ;;  %s4292_s13 = inlined_call_operand.hbm [shape: f32[16,128], index: 13, kind: output, shape index: {}]  }
   0x1   :  { %19 = vsyncpa [#allocation10], 0 }
   0x2   :  { %20 = vsyncpa [#allocation13], 0 }
   0x3   :  { %21 = vsyncpa [#allocation16], 0 }
   0x4   :  { %22 = vsyncpa [#allocation19], 0 }
   0x5   :  { %23 = vsyncpa [#allocation8], 0  ;;  %s3698_s25 = smov [#allocation9]   ;;  %s3699_s27 = smov [#allocation12]  }
   0x6   :  { %s41_s26 = sshll.u32 %s3698_s25, 4  ;;  %s66_s28 = sshll.u32 %s3699_s27, 4  ;;  %s42_s26 = int_to_ptr.vmem [resolvable:$true] %s41_s26  ;;  %s3789_s28 = int_to_ptr.vmem [resolvable:$true] %s66_s28 }
   0x7   :  { %s3466_s14 = scalar_lea.hbm %s4280_s1, 1024 }
   0x8   :  { %p3467_p0 = scmp.ne.s32.totalorder %s4280_s1, %s3466_s14  ;;  %p3470_p1 = scmp.lt.u32.totalorder %s3466_s14, %s4280_s1 }
   0xa   :  { %p3472_p2 = pnand %p3470_p1, %p3467_p0 }
   0xc   :  { %3475 = shalt.err (!%p3472_p2)
}
   0xd   :  { %s3476_s19 = scalar_lea.vmem %s42_s26, 1024  ;;  %p3481_p4 = scmp.lt.s32.totalorder %s42_s26, %s42_s26 }
   0xe   :  { %p3477_p3 = scmp.ne.s32.totalorder %s42_s26, %s3476_s19  ;;  %p3482_p5 = scmp.lt.s32.totalorder %s3476_s19, %s3476_s19 }
  0x10   :  { %p3483_p6 = por %p3482_p5, %p3481_p4 }
  0x12   :  { %p3484_p7 = pnand %p3483_p6, %p3477_p3 }
  0x14   :  { %3487 = shalt.err (!%p3484_p7)
}
  0x15   :  { %s3700_s20 = smov 64   ;;  %s3701_s21 = smov 4  }
  0x16   :  { %47 = dma.hbm_to_vmem [thread:$0]  %s4280_s1, 1024, %s42_s26, [#allocation10], %s3700_s20, %s3700_s20, %s3701_s21  }
  0x17   :  { %s3488_s27 = scalar_lea.hbm %s4282_s3, 16 }
  0x18   :  { %p3489_p8 = scmp.ne.s32.totalorder %s4282_s3, %s3488_s27  ;;  %p3492_p9 = scmp.lt.u32.totalorder %s3488_s27, %s4282_s3 }
  0x1a   :  { %p3494_p10 = pnand %p3492_p9, %p3489_p8 }
  0x1c   :  { %3497 = shalt.err (!%p3494_p10)
}
  0x1d   :  { %s3498_s16 = scalar_lea.vmem %s3789_s28, 16  ;;  %s3502_s1 = scalar_lea.vmem %s3789_s28, 32 }
  0x1e   :  { %p3499_p11 = scmp.ne.s32.totalorder %s3789_s28, %s3498_s16  ;;  %p3503_p12 = scmp.lt.s32.totalorder %s3789_s28, %s3789_s28 }
  0x1f   :  { %p3504_p13 = scmp.lt.s32.totalorder %s3502_s1, %s3498_s16 }
  0x21   :  { %p3505_p0 = por %p3504_p13, %p3503_p12 }
  0x23   :  { %p3506_p1 = pnand %p3505_p0, %p3499_p11 }
  0x25   :  { %3509 = shalt.err (!%p3506_p1)
}
  0x26   :  { %69 = dma.hbm_to_vmem [thread:$0]  %s4282_s3, 16, %s3789_s28, [#allocation13]  }
  0x27   :  { %s3702_s18 = smov [#allocation15]   ;;  %s3703_s22 = smov [#allocation18]  }
  0x28   :  { %s90_s19 = sshll.u32 %s3702_s18, 4  ;;  %s113_s23 = sshll.u32 %s3703_s22, 4  ;;  %s91_s19 = int_to_ptr.vmem [resolvable:$true] %s90_s19  ;;  %s3824_s23 = int_to_ptr.vmem [resolvable:$true] %s113_s23 }
  0x29   :  { %s3510_s27 = scalar_lea.hbm %s4285_s6, 16 }
  0x2a   :  { %p3511_p2 = scmp.ne.s32.totalorder %s4285_s6, %s3510_s27  ;;  %p3514_p3 = scmp.lt.u32.totalorder %s3510_s27, %s4285_s6 }
  0x2c   :  { %p3516_p4 = pnand %p3514_p3, %p3511_p2 }
  0x2e   :  { %3519 = shalt.err (!%p3516_p4)
}
  0x2f   :  { %s3520_s3 = scalar_lea.vmem %s91_s19, 16  ;;  %s3524_s28 = scalar_lea.vmem %s91_s19, 32 }
  0x30   :  { %p3521_p5 = scmp.ne.s32.totalorder %s91_s19, %s3520_s3  ;;  %p3525_p6 = scmp.lt.s32.totalorder %s91_s19, %s91_s19 }
  0x31   :  { %p3526_p7 = scmp.lt.s32.totalorder %s3524_s28, %s3520_s3 }
  0x33   :  { %p3527_p8 = por %p3526_p7, %p3525_p6 }
  0x35   :  { %p3528_p9 = pnand %p3527_p8, %p3521_p5 }
  0x37   :  { %3531 = shalt.err (!%p3528_p9)
}
  0x38   :  { %93 = dma.hbm_to_vmem [thread:$0]  %s4285_s6, 16, %s91_s19, [#allocation16]  }
  0x39   :  { %s3532_s18 = scalar_lea.hbm %s4288_s9, 8192 }
  0x3a   :  { %p3533_p10 = scmp.ne.s32.totalorder %s4288_s9, %s3532_s18  ;;  %p3536_p11 = scmp.lt.u32.totalorder %s3532_s18, %s4288_s9 }
  0x3c   :  { %p3538_p12 = pnand %p3536_p11, %p3533_p10 }
  0x3e   :  { %3541 = shalt.err (!%p3538_p12)
}
  0x3f   :  { %s3542_s29 = scalar_lea.vmem %s3824_s23, 8192  ;;  %p3547_p0 = scmp.lt.s32.totalorder %s3824_s23, %s3824_s23 }
  0x40   :  { %p3543_p13 = scmp.ne.s32.totalorder %s3824_s23, %s3542_s29  ;;  %p3548_p1 = scmp.lt.s32.totalorder %s3542_s29, %s3542_s29 }
  0x42   :  { %p3549_p2 = por %p3548_p1, %p3547_p0 }
  0x44   :  { %p3550_p3 = pnand %p3549_p2, %p3543_p13 }
  0x46   :  { %3553 = shalt.err (!%p3550_p3)
}
  0x47   :  { %s3704_s6 = smov 128   ;;  %s3705_s19 = smov 8  }
  0x48   :  { %119 = dma.hbm_to_vmem [thread:$0]  %s4288_s9, 8192, %s3824_s23, [#allocation19], %s3704_s6, %s3704_s6, %s3705_s19  }
  0x49   :  { %s3706_s15 = smov [#allocation6]   ;;  %s3707_s28 = smov [#allocation11]  }
  0x4a   :  { %s29_s3 = sshll.u32 %s3706_s15, 4  ;;  %s53_s16 = sshll.u32 %s3707_s28, 4  ;;  %s30_s3 = int_to_ptr.vmem [resolvable:$true] %s29_s3  ;;  %s3858_s16 = int_to_ptr.vmem [resolvable:$true] %s53_s16 }
  0x4b   :  { %s3554_s17 = scalar_lea.hbm %s4279_s0, 512 }
  0x4c   :  { %p3555_p4 = scmp.ne.s32.totalorder %s4279_s0, %s3554_s17  ;;  %p3558_p5 = scmp.lt.u32.totalorder %s3554_s17, %s4279_s0 }
  0x4e   :  { %p3560_p6 = pnand %p3558_p5, %p3555_p4 }
  0x50   :  { %3563 = shalt.err (!%p3560_p6)
}
  0x51   :  { %s3564_s9 = scalar_lea.vmem %s30_s3, 512  ;;  %p3569_p8 = scmp.lt.s32.totalorder %s30_s3, %s30_s3 }
  0x52   :  { %p3565_p7 = scmp.ne.s32.totalorder %s30_s3, %s3564_s9  ;;  %p3570_p9 = scmp.lt.s32.totalorder %s3564_s9, %s3564_s9 }
  0x54   :  { %p3571_p10 = por %p3570_p9, %p3569_p8 }
  0x56   :  { %p3572_p11 = pnand %p3571_p10, %p3565_p7 }
  0x58   :  { %3575 = shalt.err (!%p3572_p11)
}
  0x59   :  { %35 = dma.hbm_to_vmem [thread:$0]  %s4279_s0, 512, %s30_s3, [#allocation7], %s3700_s20, %s3700_s20, %s3701_s21  }
  0x5a   :  { %s3576_s14 = scalar_lea.hbm %s4281_s2, 256 }
  0x5b   :  { %p3577_p12 = scmp.ne.s32.totalorder %s4281_s2, %s3576_s14  ;;  %p3580_p13 = scmp.lt.u32.totalorder %s3576_s14, %s4281_s2 }
  0x5d   :  { %p3582_p0 = pnand %p3580_p13, %p3577_p12 }
  0x5f   :  { %3585 = shalt.err (!%p3582_p0)
}
  0x60   :  { %s3586_s17 = scalar_lea.vmem %s3858_s16, 256  ;;  %p3591_p2 = scmp.lt.s32.totalorder %s3858_s16, %s3858_s16 }
  0x61   :  { %p3587_p1 = scmp.ne.s32.totalorder %s3858_s16, %s3586_s17  ;;  %p3592_p3 = scmp.lt.s32.totalorder %s3586_s17, %s3586_s17 }
  0x63   :  { %p3593_p4 = por %p3592_p3, %p3591_p2 }
  0x65   :  { %p3594_p5 = pnand %p3593_p4, %p3587_p1 }
  0x67   :  { %3597 = shalt.err (!%p3594_p5)
}
  0x68   :  { %59 = dma.hbm_to_vmem [thread:$0]  %s4281_s2, 256, %s3858_s16, [#allocation10], %s3700_s20, %s3700_s20, %s3701_s21  }
  0x69   :  { %s3708_s18 = smov [#allocation14]   ;;  %s3709_s24 = smov [#allocation17]  }
  0x6a   :  { %s75_s22 = sshll.u32 %s3708_s18, 4  ;;  %s99_s25 = sshll.u32 %s3709_s24, 4  ;;  %s76_s22 = int_to_ptr.vmem [resolvable:$true] %s75_s22  ;;  %s3895_s25 = int_to_ptr.vmem [resolvable:$true] %s99_s25 }
  0x6b   :  { %s3598_s27 = scalar_lea.hbm %s4283_s4, 256 }
  0x6c   :  { %p3599_p6 = scmp.ne.s32.totalorder %s4283_s4, %s3598_s27  ;;  %p3602_p7 = scmp.lt.u32.totalorder %s3598_s27, %s4283_s4 }
  0x6e   :  { %p3604_p8 = pnand %p3602_p7, %p3599_p6 }
  0x70   :  { %3607 = shalt.err (!%p3604_p8)
}
  0x71   :  { %s3608_s2 = scalar_lea.vmem %s76_s22, 256  ;;  %p3613_p10 = scmp.lt.s32.totalorder %s76_s22, %s76_s22 }
  0x72   :  { %p3609_p9 = scmp.ne.s32.totalorder %s76_s22, %s3608_s2  ;;  %p3614_p11 = scmp.lt.s32.totalorder %s3608_s2, %s3608_s2 }
  0x74   :  { %p3615_p12 = por %p3614_p11, %p3613_p10 }
  0x76   :  { %p3616_p13 = pnand %p3615_p12, %p3609_p9 }
  0x78   :  { %3619 = shalt.err (!%p3616_p13)
}
  0x79   :  { %81 = dma.hbm_to_vmem [thread:$0]  %s4283_s4, 256, %s76_s22, [#allocation13], %s3700_s20, %s3700_s20, %s3701_s21  }
  0x7a   :  { %s3620_s17 = scalar_lea.hbm %s4286_s7, 1024 }
  0x7b   :  { %p3621_p0 = scmp.ne.s32.totalorder %s4286_s7, %s3620_s17  ;;  %p3624_p1 = scmp.lt.u32.totalorder %s3620_s17, %s4286_s7 }
  0x7d   :  { %p3626_p2 = pnand %p3624_p1, %p3621_p0 }
  0x7f   :  { %3629 = shalt.err (!%p3626_p2)
}
  0x80   :  { %s3630_s9 = scalar_lea.vmem %s3895_s25, 1024  ;;  %p3635_p4 = scmp.lt.s32.totalorder %s3895_s25, %s3895_s25 }
  0x81   :  { %p3631_p3 = scmp.ne.s32.totalorder %s3895_s25, %s3630_s9  ;;  %p3636_p5 = scmp.lt.s32.totalorder %s3630_s9, %s3630_s9 }
  0x83   :  { %p3637_p6 = por %p3636_p5, %p3635_p4 }
  0x85   :  { %p3638_p7 = pnand %p3637_p6, %p3631_p3 }
  0x87   :  { %3641 = shalt.err (!%p3638_p7)
}
  0x88   :  { %s3710_s4 = smov 256   ;;  %s3711_s22 = smov 16  }
  0x89   :  { %105 = dma.hbm_to_vmem [thread:$0]  %s4286_s7, 1024, %s3895_s25, [#allocation16], %s3710_s4, %s3710_s4, %s3711_s22  }
  0x8a   :  { %s3712_s29 = smov [#allocation20]   ;;  %s3642_s2 = scalar_lea.hbm %s4290_s11, 2048 }
  0x8b   :  { %s127_s30 = sshll.u32 %s3712_s29, 4  ;;  %p3643_p8 = scmp.ne.s32.totalorder %s4290_s11, %s3642_s2  ;;  %s128_s30 = int_to_ptr.vmem [resolvable:$true] %s127_s30 }
  0x8c   :  { %p3646_p9 = scmp.lt.u32.totalorder %s3642_s2, %s4290_s11 }
  0x8e   :  { %p3648_p10 = pnand %p3646_p9, %p3643_p8 }
  0x90   :  { %3651 = shalt.err (!%p3648_p10)
}
  0x91   :  { %s3652_s17 = scalar_lea.vmem %s128_s30, 2048  ;;  %p3657_p12 = scmp.lt.s32.totalorder %s128_s30, %s128_s30 }
  0x92   :  { %p3653_p11 = scmp.ne.s32.totalorder %s128_s30, %s3652_s17  ;;  %p3658_p13 = scmp.lt.s32.totalorder %s3652_s17, %s3652_s17 }
  0x94   :  { %p3659_p0 = por %p3658_p13, %p3657_p12 }
  0x96   :  { %p3660_p1 = pnand %p3659_p0, %p3653_p11 }
  0x98   :  { %3663 = shalt.err (!%p3660_p1)
}
  0x99   :  { %133 = dma.hbm_to_vmem [thread:$0]  %s4290_s11, 2048, %s128_s30, [#allocation19], %s3700_s20, %s3700_s20, %s3701_s21  }
  0x9a   :  { %3686 = dma.done.wait [#allocation7], 512  }
  0x9b   :  { %3687 = vsyncadd [#allocation7], 4294966784 }
  0x9c   :  { %3688 = dma.done.wait [#allocation10], 1280  }
  0x9d   :  { %3689 = vsyncadd [#allocation10], 4294966016 }
  0x9e   :  { %3690 = dma.done.wait [#allocation13], 272  }
  0x9f   :  { %3691 = vsyncadd [#allocation13], 4294967024 }
  0xa0   :  { %3692 = dma.done.wait [#allocation16], 1040  }
  0xa1   :  { %3693 = vsyncadd [#allocation16], 4294966256 }
  0xa2   :  { %3694 = dma.done.wait [#allocation19], 10240  }
  0xa3   :  { %3695 = vsyncadd [#allocation19], 4294957056  ;;  %vm168_vm0 = vcmask 261120   ;;  %v3713_v0 = vmov 0.0   ;;  %v3182_v1 = vld [vmem:[#allocation9] sm:$0xff]   ;;  %v3183_v2 = vld [vmem:[#allocation9 + $0x8] sm:$0xff]  }
  0xa4   :  { %169 = vst.msk [vmem:[#allocation2] sm:$0xff] %vm168_vm0, %v3713_v0  ;;  %170 = vst.msk [vmem:[#allocation2 + $0x8] sm:$0xff] %vm168_vm0, %v3713_v0  ;;  %3137 = vmatprep.subr.bf16.mxu1 %v3182_v1  ;;  %2973 = vmatprep.subr.bf16.mxu0 %v3182_v1  ;;  %v3184_v3 = vld [vmem:[#allocation9 + $0x10] sm:$0xff]   ;;  %v3185_v4 = vld [vmem:[#allocation9 + $0x18] sm:$0xff]   ;;  %vm3714_vm1 = vmmov 0   ;;  %s3715_s11 = smov 32  }
  0xa5   :  { %171 = vst.msk [vmem:[#allocation3] sm:$0xff] %vm168_vm0, %v3713_v0  ;;  %172 = vst.msk [vmem:[#allocation3 + $0x8] sm:$0xff] %vm168_vm0, %v3713_v0  ;;  %3145 = vmatpush3.bf16.msra.mxu1 %v3182_v1  ;;  %2974 = vmatpush3.bf16.msra.mxu0 %v3182_v1  ;;  %v3190_v5 = vld [vmem:[#allocation6 + $0x10] sm:$0xff]   ;;  %v3193_v6 = vld [vmem:[#allocation6] sm:$0xff]   ;;  %s3718_s22 = smov [#allocation21]  }
  0xa6   :  { %3138 = vmatprep.subr.bf16.mxu1 %v3183_v2  ;;  %2975 = vmatprep.subr.bf16.mxu0 %v3183_v2  ;;  %v3186_v7 = vld [vmem:[#allocation9 + $0x20] sm:$0xff]   ;;  %v3187_v8 = vld [vmem:[#allocation9 + $0x28] sm:$0xff]   ;;  %v3188_v9 = vld [vmem:[#allocation9 + $0x30] sm:$0xff]   ;;  %s2708_s23 = sshll.u32 %s3718_s22, 4  ;;  %s2709_s23 = int_to_ptr.vmem [resolvable:$true] %s2708_s23 }
  0xa7   :  { %2993 = vmatprep.mubr.bf16.mxu1 %v3190_v5  ;;  %2989 = vmatprep.mubr.bf16.mxu0 %v3193_v6  ;;  %v3189_v10 = vld [vmem:[#allocation9 + $0x38] sm:$0xff]   ;;  %v3194_v12 = vld [vmem:[#allocation6 + $0x8] sm:$0xff]   ;;  %v3192_v13 = vld [vmem:[#allocation11] sm:$0xff]   ;;  %s3664_s27 = scalar_lea.vmem %s2709_s23, 256  ;;  %p3669_p3 = scmp.lt.s32.totalorder %s2709_s23, %s2709_s23 }
  0xa8   :  { %v3191_v11 = vld [vmem:[#allocation6 + $0x18] sm:$0xff]   ;;  %v3195_v14 = vld [vmem:[#allocation11 + $0x8] sm:$0xff]   ;;  %v2724_v17 = vld [vmem:[#allocation12] ss:$0 sm:$0xff]  ;;  %p3665_p2 = scmp.ne.s32.totalorder %s2709_s23, %s3664_s27  ;;  %p3670_p4 = scmp.lt.s32.totalorder %s3664_s27, %s3664_s27 }
  0xa9   :  { %3146 = vmatpush3.bf16.msra.mxu1 %v3183_v2  ;;  %2976 = vmatpush3.bf16.msra.mxu0 %v3183_v2  ;;  %v3196_v51 = vld [vmem:[#allocation11] sm:$0xff]   ;;  %v3197_v52 = vld [vmem:[#allocation11 + $0x8] sm:$0xff]  }
  0xaa   :  { %3139 = vmatprep.subr.bf16.mxu1 %v3184_v3  ;;  %2977 = vmatprep.subr.bf16.mxu0 %v3184_v3  ;;  %p3671_p5 = por %p3670_p4, %p3669_p3 }
  0xab   :  { %v349_v15 = vld [vmem:[#allocation2] sm:$0xff] }
  0xac   :  { %v352_v16 = vpack.c.bf16 %v349_v15, %v349_v15  ;;  %v350_v40 = vld [vmem:[#allocation3] sm:$0xff]  ;;  %p3672_p6 = pnand %p3671_p5, %p3665_p2 }
  0xad   :  { %3147 = vmatpush3.bf16.msra.mxu1 %v3184_v3  ;;  %2978 = vmatpush3.bf16.msra.mxu0 %v3184_v3 }
  0xae   :  { %3140 = vmatprep.subr.bf16.mxu1 %v3185_v4  ;;  %2979 = vmatprep.subr.bf16.mxu0 %v3185_v4 }
  0xb1   :  { %3148 = vmatpush3.bf16.msra.mxu1 %v3185_v4  ;;  %2980 = vmatpush3.bf16.msra.mxu0 %v3185_v4 }
  0xb2   :  { %3141 = vmatprep.subr.bf16.mxu1 %v3186_v7  ;;  %2981 = vmatprep.subr.bf16.mxu0 %v3186_v7 }
  0xb5   :  { %3149 = vmatpush3.bf16.msra.mxu1 %v3186_v7  ;;  %2982 = vmatpush3.bf16.msra.mxu0 %v3186_v7 }
  0xb6   :  { %3142 = vmatprep.subr.bf16.mxu1 %v3187_v8  ;;  %2983 = vmatprep.subr.bf16.mxu0 %v3187_v8 }
  0xb9   :  { %3150 = vmatpush3.bf16.msra.mxu1 %v3187_v8  ;;  %2984 = vmatpush3.bf16.msra.mxu0 %v3187_v8 }
  0xba   :  { %3143 = vmatprep.subr.bf16.mxu1 %v3188_v9  ;;  %2985 = vmatprep.subr.bf16.mxu0 %v3188_v9 }
  0xbd   :  { %3151 = vmatpush3.bf16.msra.mxu1 %v3188_v9  ;;  %2986 = vmatpush3.bf16.msra.mxu0 %v3188_v9 }
  0xbe   :  { %3144 = vmatprep.subr.bf16.mxu1 %v3189_v10  ;;  %2987 = vmatprep.subr.bf16.mxu0 %v3189_v10 }
  0xc1   :  { %3152 = vmatpush3.bf16.msra.mxu1 %v3189_v10  ;;  %2988 = vmatpush3.bf16.msra.mxu0 %v3189_v10  ;;  %v3198_v10 = vld [vmem:[#allocation11] sm:$0xff]  }
  0xc2   :  { %2997 = vmatprep.subr.bf16.mxu1 %v3713_v0  ;;  %3037 = vmatprep.subr.bf16.mxu0 %v3713_v0 }
  0xc4   :  { %2994 = vmatmul.mubr.bf16.vlgmr.msra.gmra.mrb[0].mxu1 %v3191_v11  ;;  %2990 = vmatmul.mubr.bf16.vlgmr.msra.gmra.mrb[0].mxu0 %v3194_v12  ;;  %v3199_v11 = vld [vmem:[#allocation11 + $0x8] sm:$0xff]  }
  0xc5   :  { %2998 = vmatpush3.bf16.msra.mxu1 %v3192_v13  ;;  %3001 = vmatprep.mubr.msk.bf16.mxu1 %vm3714_vm1, %v3713_v0 }
  0xc6   :  { %2999 = vmatprep.subr.bf16.mxu1 %v3713_v0  ;;  %3041 = vmatprep.mubr.msk.bf16.mxu0 %vm3714_vm1, %v3713_v0 }
  0xc9   :  { %3000 = vmatpush3.bf16.msra.mxu1 %v3195_v14 }
  0xca   :  { %3005 = vmatprep.subr.bf16.mxu1 %v3713_v0 }
  0xcc   :  { %3002 = vmatmul.mubr.msk.bf16.vlgmr.msra.gmra.mrb[4].mxu1 %vm168_vm0, %v352_v16 }
  0xcd   :  { %3009 = vmatprep.mubr.msk.bf16.mxu1 %vm3714_vm1, %v3713_v0  ;;  %3006 = vmatpush3.bf16.msra.mxu1 %v3196_v51 }
  0xce   :  { %3007 = vmatprep.subr.bf16.mxu1 %v3713_v0 }
  0xd1   :  { %3008 = vmatpush3.bf16.msra.mxu1 %v3197_v52 }
  0xd2   :  { %3013 = vmatprep.subr.bf16.mxu1 %v3713_v0 }
 0x197   :  { %v2995_v18 = vpop.f32.mrb[0].mxu1  ;;  %v2991_v19 = vpop.f32.mrb[0].mxu0 }
 0x198   :  { %v3963_v20 = vadd.f32 %v2995_v18, %v2724_v17  ;;  %v326_v21 = vpop.f32.mrb[1].mxu1  ;;  %v3965_v22 = vadd.f32 %v2991_v19, %v2724_v17  ;;  %v310_v23 = vpop.f32.mrb[1].mxu0 }
 0x199   :  { %v3967_v24 = vadd.f32 %v2724_v17, %v326_v21  ;;  %v2996_v25 = vpop.f32.mrb[2].mxu1  ;;  %v2992_v26 = vpop.f32.mrb[2].mxu0  ;;  %v311_v33 = vadd.f32 %v2724_v17, %v310_v23 }
 0x19a   :  { %v3969_v27 = vadd.f32 %v2996_v25, %v2724_v17  ;;  %v329_v28 = vpop.f32.mrb[3].mxu1  ;;  %v3971_v29 = vadd.f32 %v2992_v26, %v2724_v17  ;;  %v313_v30 = vpop.f32.mrb[3].mxu0 }
 0x19b   :  { %v3973_v31 = vadd.f32 %v2724_v17, %v329_v28  ;;  %v314_v32 = vadd.f32 %v2724_v17, %v313_v30 }
 0x19f   :  { %v407_v34 = vpop.f32.mrb[4].mxu1 }
 0x1a0   :  { %v413_v35 = vadd.f32 %v407_v34, %v311_v33  ;;  %v3003_v36 = vpop.f32.mrb[5].mxu1 }
 0x1a1   :  { %v410_v37 = vpop.f32.mrb[6].mxu1 }
 0x1a2   :  { %v3004_v38 = vpop.f32.mrb[7].mxu1  ;;  %3338 = vtanh.f32 %v413_v35  ;;  %v2740_v41 = vmul.f32 -1.442695, %v413_v35  ;;  %v3200_v37 = vld [vmem:[#allocation11] sm:$0xff]  }
 0x1a3   :  { %v3201_v38 = vld [vmem:[#allocation11 + $0x8] sm:$0xff]  }
 0x1a4   :  { %3340 = vpow2.f32 %v2740_v41 }
 0x1ac   :  { %v3339_v39 = vpop.eup %3338 }
 0x1ad   :  { %427 = vrot.lane.b32.xlu0 %v3339_v39, %s3700_s20 }
 0x1ae   :  { %v3341_v42 = vpop.eup %3340 }
 0x1af   :  { %v417_v43 = vadd.f32 1.0, %v3341_v42 }
 0x1b1   :  { %422 = vrot.lane.b32.xlu0 %v350_v40, %s3715_s11  ;;  %3342 = vrcp.f32 %v417_v43 }
 0x1bb   :  { %v3343_v44 = vpop.eup %3342 }
 0x21f   :  { %v428_v45 = vpop.permute.xlu0 %427 }
 0x220   :  { %v430_v46 = vmul.f32 %v3343_v44, %v428_v45 }
 0x222   :  { %432 = vrot.lane.b32.xlu1 %v430_v46, %s3715_s11 }
 0x223   :  { %v423_v47 = vpop.permute.xlu0 %422 }
 0x224   :  { %v425_v48 = vmul.f32 %v3343_v44, %v423_v47 }
 0x294   :  { %v433_v49 = vpop.permute.xlu1 %432 }
 0x295   :  { %v435_v50 = vadd.f32 %v433_v49, %v425_v48 }
 0x297   :  { %3344 = vtanh.f32 %v435_v50 }
 0x2a1   :  { %v3345_v53 = vpop.eup %3344 }
 0x2a2   :  { %438 = vrot.lane.b32.xlu1 %v3345_v53, %s3700_s20 }
 0x314   :  { %v439_v54 = vpop.permute.xlu1 %438 }
 0x315   :  { %v3981_v55 = vmul.f32 %v3343_v44, %v439_v54 }
 0x317   :  { %v449_v56 = vpack.c.bf16 %v3981_v55, %v3981_v55 }
 0x319   :  { %455 = vrot.lane.b32.xlu0 %v449_v56, %s3715_s11 }
 0x38b   :  { %v456_v57 = vpop.permute.xlu0 %455 }
 0x38c   :  { %3010 = vmatmul.mubr.msk.bf16.vlgmr.msra.gmra.mrb[8].mxu1 %vm168_vm0, %v456_v57 }
 0x38d   :  { %3017 = vmatprep.mubr.msk.bf16.mxu1 %vm3714_vm1, %v3713_v0  ;;  %3014 = vmatpush3.bf16.msra.mxu1 %v3198_v10 }
 0x38e   :  { %3015 = vmatprep.subr.bf16.mxu1 %v3713_v0 }
 0x391   :  { %3016 = vmatpush3.bf16.msra.mxu1 %v3199_v11 }
 0x392   :  { %3021 = vmatprep.subr.bf16.mxu1 %v3713_v0 }
 0x45f   :  { %v506_v58 = vpop.f32.mrb[8].mxu1 }
 0x460   :  { %v512_v59 = vadd.f32 %v506_v58, %v314_v32  ;;  %v3011_v60 = vpop.f32.mrb[9].mxu1 }
 0x461   :  { %v509_v61 = vpop.f32.mrb[10].mxu1  ;;  %v3203_v60 = vld [vmem:[#allocation11 + $0x8] sm:$0xff]  }
 0x462   :  { %3346 = vtanh.f32 %v512_v59  ;;  %v3012_v62 = vpop.f32.mrb[11].mxu1  ;;  %v2744_v1 = vmul.f32 -1.442695, %v512_v59  ;;  %v3202_v59 = vld [vmem:[#allocation11] sm:$0xff]  }
 0x464   :  { %3348 = vpow2.f32 %v2744_v1 }
 0x46c   :  { %v3347_v63 = vpop.eup %3346 }
 0x46d   :  { %522 = vrot.lane.b32.xlu1 %v3347_v63, %s3700_s20 }
 0x46e   :  { %v3349_v2 = vpop.eup %3348 }
 0x46f   :  { %v516_v3 = vadd.f32 1.0, %v3349_v2 }
 0x471   :  { %3350 = vrcp.f32 %v516_v3 }
 0x47b   :  { %v3351_v4 = vpop.eup %3350 }
 0x47c   :  { %v520_v7 = vmul.f32 %v3351_v4, %v435_v50 }
 0x4df   :  { %v523_v5 = vpop.permute.xlu1 %522 }
 0x4e0   :  { %v525_v6 = vmul.f32 %v3351_v4, %v523_v5 }
 0x4e2   :  { %527 = vrot.lane.b32.xlu0 %v525_v6, %s3715_s11 }
 0x554   :  { %v528_v8 = vpop.permute.xlu0 %527 }
 0x555   :  { %v530_v9 = vadd.f32 %v528_v8, %v520_v7 }
 0x557   :  { %3352 = vtanh.f32 %v530_v9 }
 0x561   :  { %v3353_v12 = vpop.eup %3352 }
 0x562   :  { %533 = vrot.lane.b32.xlu1 %v3353_v12, %s3700_s20 }
 0x5d4   :  { %v534_v13 = vpop.permute.xlu1 %533 }
 0x5d5   :  { %v3994_v14 = vmul.f32 %v3351_v4, %v534_v13 }
 0x5d7   :  { %v545_v15 = vpack.c.bf16 %v3994_v14, %v3994_v14 }
 0x5d9   :  { %551 = vrot.lane.b32.xlu0 %v545_v15, %s3715_s11 }
 0x64b   :  { %v552_v16 = vpop.permute.xlu0 %551 }
 0x64c   :  { %3018 = vmatmul.mubr.msk.bf16.vlgmr.msra.gmra.mrb[12].mxu1 %vm168_vm0, %v552_v16 }
 0x64d   :  { %3025 = vmatprep.mubr.msk.bf16.mxu1 %vm3714_vm1, %v3713_v0  ;;  %3022 = vmatpush3.bf16.msra.mxu1 %v3200_v37 }
 0x64e   :  { %3023 = vmatprep.subr.bf16.mxu1 %v3713_v0 }
 0x651   :  { %3024 = vmatpush3.bf16.msra.mxu1 %v3201_v38 }
 0x652   :  { %3029 = vmatprep.subr.bf16.mxu1 %v3713_v0 }
 0x71f   :  { %v602_v17 = vpop.f32.mrb[12].mxu1 }
 0x720   :  { %v608_v18 = vadd.f32 %v602_v17, %v3965_v22  ;;  %v3019_v19 = vpop.f32.mrb[13].mxu1 }
 0x721   :  { %v605_v21 = vpop.f32.mrb[14].mxu1  ;;  %v3205_v19 = vld [vmem:[#allocation11 + $0x8] sm:$0xff]  }
 0x722   :  { %3354 = vtanh.f32 %v608_v18  ;;  %v3020_v23 = vpop.f32.mrb[15].mxu1  ;;  %v2748_v26 = vmul.f32 -1.442695, %v608_v18  ;;  %v3204_v18 = vld [vmem:[#allocation11] sm:$0xff]  }
 0x723   :  { %3038 = vmatpush3.bf16.msra.mxu0 %v3204_v18  ;;  %v4086_v18 = vld [vmem:[%s4284_s5] sm:$0xff]  }
 0x724   :  { %3356 = vpow2.f32 %v2748_v26  ;;  %3039 = vmatprep.subr.bf16.mxu0 %v3713_v0 }
 0x727   :  { %3040 = vmatpush3.bf16.msra.mxu0 %v3205_v19  ;;  %v4094_v19 = vld [vmem:[%s4284_s5 + $0x8] sm:$0xff]   ;;  %s3716_s5 = smov 96  }
 0x728   :  { %3053 = vmatprep.subr.bf16.mxu0 %v3713_v0 }
 0x72c   :  { %v3355_v25 = vpop.eup %3354 }
 0x72d   :  { %618 = vrot.lane.b32.xlu1 %v3355_v25, %s3700_s20 }
 0x72e   :  { %v3357_v28 = vpop.eup %3356 }
 0x72f   :  { %v612_v30 = vadd.f32 1.0, %v3357_v28 }
 0x731   :  { %3358 = vrcp.f32 %v612_v30 }
 0x73b   :  { %v3359_v32 = vpop.eup %3358 }
 0x73c   :  { %v616_v35 = vmul.f32 %v3359_v32, %v530_v9 }
 0x79f   :  { %v619_v33 = vpop.permute.xlu1 %618 }
 0x7a0   :  { %v621_v34 = vmul.f32 %v3359_v32, %v619_v33 }
 0x7a2   :  { %623 = vrot.lane.b32.xlu0 %v621_v34, %s3715_s11 }
 0x814   :  { %v624_v36 = vpop.permute.xlu0 %623 }
 0x815   :  { %v626_v22 = vadd.f32 %v624_v36, %v616_v35 }
 0x817   :  { %3360 = vtanh.f32 %v626_v22 }
 0x821   :  { %v3361_v39 = vpop.eup %3360 }
 0x822   :  { %629 = vrot.lane.b32.xlu1 %v3361_v39, %s3700_s20 }
 0x894   :  { %v630_v40 = vpop.permute.xlu1 %629 }
 0x895   :  { %v4008_v41 = vmul.f32 %v3359_v32, %v630_v40 }
 0x897   :  { %v641_v42 = vpack.c.bf16 %v4008_v41, %v4008_v41 }
 0x899   :  { %647 = vrot.lane.b32.xlu0 %v641_v42, %s3715_s11 }
 0x90b   :  { %v648_v43 = vpop.permute.xlu0 %647 }
 0x90c   :  { %3026 = vmatmul.mubr.msk.bf16.vlgmr.msra.gmra.mrb[16].mxu1 %vm168_vm0, %v648_v43 }
 0x90d   :  { %3033 = vmatprep.mubr.msk.bf16.mxu1 %vm3714_vm1, %v3713_v0  ;;  %3030 = vmatpush3.bf16.msra.mxu1 %v3202_v59 }
 0x90e   :  { %3031 = vmatprep.subr.bf16.mxu1 %v3713_v0 }
 0x911   :  { %3032 = vmatpush3.bf16.msra.mxu1 %v3203_v60 }
 0x912   :  { %3045 = vmatprep.subr.bf16.mxu1 %v3713_v0 }
 0x9df   :  { %v698_v44 = vpop.f32.mrb[16].mxu1 }
 0x9e0   :  { %v704_v45 = vadd.f32 %v698_v44, %v3971_v29  ;;  %v3027_v46 = vpop.f32.mrb[17].mxu1 }
 0x9e1   :  { %v701_v47 = vpop.f32.mrb[18].mxu1  ;;  %v3207_v46 = vld [vmem:[#allocation11 + $0x8] sm:$0xff]  }
 0x9e2   :  { %3362 = vtanh.f32 %v704_v45  ;;  %v3028_v48 = vpop.f32.mrb[19].mxu1  ;;  %v2752_v50 = vmul.f32 -1.442695, %v704_v45  ;;  %v3206_v45 = vld [vmem:[#allocation11] sm:$0xff]  }
 0x9e4   :  { %3364 = vpow2.f32 %v2752_v50 }
 0x9ec   :  { %v3363_v49 = vpop.eup %3362 }
 0x9ed   :  { %714 = vrot.lane.b32.xlu1 %v3363_v49, %s3700_s20 }
 0x9ee   :  { %v3365_v51 = vpop.eup %3364 }
 0x9ef   :  { %v708_v52 = vadd.f32 1.0, %v3365_v51 }
 0x9f1   :  { %3366 = vrcp.f32 %v708_v52 }
 0x9fb   :  { %v3367_v53 = vpop.eup %3366 }
 0x9fc   :  { %v712_v57 = vmul.f32 %v3367_v53, %v626_v22 }
 0xa5f   :  { %v715_v54 = vpop.permute.xlu1 %714 }
 0xa60   :  { %v717_v56 = vmul.f32 %v3367_v53, %v715_v54 }
 0xa62   :  { %719 = vrot.lane.b32.xlu0 %v717_v56, %s3715_s11 }
 0xad4   :  { %v720_v58 = vpop.permute.xlu0 %719 }
 0xad5   :  { %v722_v29 = vadd.f32 %v720_v58, %v712_v57 }
 0xad7   :  { %3368 = vtanh.f32 %v722_v29 }
 0xae1   :  { %v3369_v61 = vpop.eup %3368 }
 0xae2   :  { %725 = vrot.lane.b32.xlu1 %v3369_v61, %s3700_s20 }
 0xb54   :  { %v726_v62 = vpop.permute.xlu1 %725 }
 0xb55   :  { %v4022_v63 = vmul.f32 %v3367_v53, %v726_v62 }
 0xb57   :  { %v737_v1 = vpack.c.bf16 %v4022_v63, %v4022_v63 }
 0xb59   :  { %743 = vrot.lane.b32.xlu0 %v737_v1, %s3715_s11 }
 0xbcb   :  { %v744_v2 = vpop.permute.xlu0 %743 }
 0xbcc   :  { %3034 = vmatmul.mubr.msk.bf16.vlgmr.msra.gmra.mrb[20].mxu1 %vm168_vm0, %v744_v2 }
 0xbcd   :  { %3049 = vmatprep.mubr.msk.bf16.mxu1 %vm3714_vm1, %v3713_v0  ;;  %3046 = vmatpush3.bf16.msra.mxu1 %v3206_v45 }
 0xbce   :  { %3047 = vmatprep.subr.bf16.mxu1 %v3713_v0 }
 0xbd1   :  { %3048 = vmatpush3.bf16.msra.mxu1 %v3207_v46 }
 0xc9f   :  { %v794_v3 = vpop.f32.mrb[20].mxu1 }
 0xca0   :  { %v800_v4 = vadd.f32 %v794_v3, %v3967_v24  ;;  %v3035_v5 = vpop.f32.mrb[21].mxu1 }
 0xca1   :  { %v797_v6 = vpop.f32.mrb[22].mxu1 }
 0xca2   :  { %3370 = vtanh.f32 %v800_v4  ;;  %v3036_v7 = vpop.f32.mrb[23].mxu1  ;;  %v2756_v9 = vmul.f32 -1.442695, %v800_v4  ;;  %v3208_v6 = vld [vmem:[#allocation14] sm:$0xff]  }
 0xca3   :  { %v3209_v7 = vld [vmem:[#allocation14 + $0x8] sm:$0xff]   ;;  %3061 = vmatprep.subr.bf16.mxu1 %v3208_v6 }
 0xca4   :  { %3372 = vpow2.f32 %v2756_v9 }
 0xcac   :  { %v3371_v8 = vpop.eup %3370 }
 0xcad   :  { %810 = vrot.lane.b32.xlu1 %v3371_v8, %s3700_s20  ;;  %v3211_v8 = vld [vmem:[#allocation11 + $0x8] sm:$0xff]  }
 0xcae   :  { %v3373_v10 = vpop.eup %3372 }
 0xcaf   :  { %v804_v11 = vadd.f32 1.0, %v3373_v10 }
 0xcb1   :  { %3374 = vrcp.f32 %v804_v11 }
 0xcbb   :  { %v3375_v12 = vpop.eup %3374 }
 0xcbc   :  { %v808_v16 = vmul.f32 %v3375_v12, %v722_v29 }
 0xd1f   :  { %v811_v13 = vpop.permute.xlu1 %810 }
 0xd20   :  { %v813_v15 = vmul.f32 %v3375_v12, %v811_v13 }
 0xd22   :  { %815 = vrot.lane.b32.xlu0 %v813_v15, %s3715_s11 }
 0xd94   :  { %v816_v17 = vpop.permute.xlu0 %815 }
 0xd95   :  { %v818_v24 = vadd.f32 %v816_v17, %v808_v16 }
 0xd97   :  { %3376 = vtanh.f32 %v818_v24 }
 0xda1   :  { %v3377_v21 = vpop.eup %3376 }
 0xda2   :  { %821 = vrot.lane.b32.xlu1 %v3377_v21, %s3700_s20  ;;  %v1248_v21 = vld [vmem:[#allocation3 + $0x8] sm:$0xff] }
 0xe14   :  { %v822_v23 = vpop.permute.xlu1 %821 }
 0xe15   :  { %v4036_v25 = vmul.f32 %v3375_v12, %v822_v23 }
 0xe17   :  { %v833_v26 = vpack.c.bf16 %v4036_v25, %v4036_v25 }
 0xe19   :  { %839 = vrot.lane.b32.xlu0 %v833_v26, %s3715_s11  ;;  %v1246_v26 = vld [vmem:[#allocation2 + $0x8] sm:$0xff] }
 0xe8b   :  { %v840_v28 = vpop.permute.xlu0 %839 }
 0xe8c   :  { %3042 = vmatmul.mubr.msk.bf16.vlgmr.msra.gmra.mrb[4].mxu0 %vm168_vm0, %v840_v28  ;;  %v1250_v28 = vpack.c.bf16 %v1246_v26, %v1246_v26 }
 0xe8d   :  { %3057 = vmatprep.mubr.msk.bf16.mxu0 %vm3714_vm1, %v3713_v0 }
 0xf5f   :  { %v890_v30 = vpop.f32.mrb[4].mxu0 }
 0xf60   :  { %v896_v32 = vadd.f32 %v890_v30, %v3973_v31  ;;  %v3043_v33 = vpop.f32.mrb[5].mxu0 }
 0xf61   :  { %v893_v34 = vpop.f32.mrb[6].mxu0 }
 0xf62   :  { %3378 = vtanh.f32 %v896_v32  ;;  %v3044_v35 = vpop.f32.mrb[7].mxu0  ;;  %v2760_v22 = vmul.f32 -1.442695, %v896_v32 }
 0xf64   :  { %3380 = vpow2.f32 %v2760_v22 }
 0xf6c   :  { %v3379_v36 = vpop.eup %3378 }
 0xf6d   :  { %906 = vrot.lane.b32.xlu1 %v3379_v36, %s3700_s20 }
 0xf6e   :  { %v3381_v37 = vpop.eup %3380 }
 0xf6f   :  { %v900_v38 = vadd.f32 1.0, %v3381_v37 }
 0xf71   :  { %3382 = vrcp.f32 %v900_v38 }
 0xf7b   :  { %v3383_v39 = vpop.eup %3382 }
 0xf7c   :  { %v904_v43 = vmul.f32 %v3383_v39, %v818_v24 }
 0xfdf   :  { %v907_v40 = vpop.permute.xlu1 %906 }
 0xfe0   :  { %v909_v42 = vmul.f32 %v3383_v39, %v907_v40 }
 0xfe2   :  { %911 = vrot.lane.b32.xlu0 %v909_v42, %s3715_s11 }
0x1054   :  { %v912_v44 = vpop.permute.xlu0 %911 }
0x1055   :  { %v914_v31 = vadd.f32 %v912_v44, %v904_v43 }
0x1057   :  { %3384 = vtanh.f32 %v914_v31 }
0x1061   :  { %v3385_v47 = vpop.eup %3384 }
0x1062   :  { %917 = vrot.lane.b32.xlu1 %v3385_v47, %s3700_s20 }
0x10d4   :  { %v918_v48 = vpop.permute.xlu1 %917 }
0x10d5   :  { %v4049_v49 = vmul.f32 %v3383_v39, %v918_v48  ;;  %v4120_v39 = vld [vmem:[#allocation15] ss:$0 sm:$0xff] }
0x10d7   :  { %v929_v50 = vpack.c.bf16 %v4049_v49, %v4049_v49 }
0x10d9   :  { %935 = vrot.lane.b32.xlu0 %v929_v50, %s3715_s11 }
0x114b   :  { %v936_v51 = vpop.permute.xlu0 %935 }
0x114c   :  { %3050 = vmatmul.mubr.msk.bf16.vlgmr.msra.gmra.mrb[24].mxu1 %vm168_vm0, %v936_v51 }
0x114d   :  { %3062 = vmatpush3.bf16.msra.mxu1 %v3208_v6 }
0x114e   :  { %3063 = vmatprep.subr.bf16.mxu1 %v3209_v7 }
0x1151   :  { %3064 = vmatpush3.bf16.msra.mxu1 %v3209_v7 }
0x1152   :  { %3089 = vmatprep.subr.bf16.mxu1 %v3713_v0 }
0x121f   :  { %v986_v52 = vpop.f32.mrb[24].mxu1 }
0x1220   :  { %v992_v53 = vadd.f32 %v986_v52, %v3963_v20  ;;  %v3051_v54 = vpop.f32.mrb[25].mxu1 }
0x1221   :  { %v989_v56 = vpop.f32.mrb[26].mxu1 }
0x1222   :  { %3386 = vtanh.f32 %v992_v53  ;;  %v3052_v57 = vpop.f32.mrb[27].mxu1  ;;  %v2764_v29 = vmul.f32 -1.442695, %v992_v53 }
0x1224   :  { %3388 = vpow2.f32 %v2764_v29 }
0x122c   :  { %v3387_v58 = vpop.eup %3386 }
0x122d   :  { %1002 = vrot.lane.b32.xlu1 %v3387_v58, %s3700_s20 }
0x122e   :  { %v3389_v59 = vpop.eup %3388 }
0x122f   :  { %v996_v60 = vadd.f32 1.0, %v3389_v59 }
0x1231   :  { %3390 = vrcp.f32 %v996_v60 }
0x123b   :  { %v3391_v61 = vpop.eup %3390 }
0x123c   :  { %v1000_v20 = vmul.f32 %v3391_v61, %v914_v31 }
0x129f   :  { %v1003_v62 = vpop.permute.xlu1 %1002 }
0x12a0   :  { %v1005_v1 = vmul.f32 %v3391_v61, %v1003_v62 }
0x12a2   :  { %1007 = vrot.lane.b32.xlu0 %v1005_v1, %s3715_s11 }
0x12a6   :  { %443 = vrot.lane.b32.xlu0 %v3981_v55, %s3715_s11 }
0x12aa   :  { %634 = vrot.lane.b32.xlu0 %v4008_v41, %s3715_s11  ;;  %v3210_v41 = vld [vmem:[#allocation11] sm:$0xff]  }
0x12ab   :  { %3054 = vmatpush3.bf16.msra.mxu0 %v3210_v41 }
0x12ac   :  { %3055 = vmatprep.subr.bf16.mxu0 %v3713_v0 }
0x12af   :  { %3056 = vmatpush3.bf16.msra.mxu0 %v3211_v8 }
0x12b0   :  { %3073 = vmatprep.subr.bf16.mxu0 %v3713_v0 }
0x1314   :  { %v1008_v2 = vpop.permute.xlu0 %1007 }
0x1315   :  { %v4062_v3 = vadd.f32 %v1008_v2, %v1000_v20 }
0x1317   :  { %3392 = vtanh.f32 %v4062_v3 }
0x1318   :  { %v444_v4 = vpop.permute.xlu0 %443 }
0x1319   :  { %446 = vst.msk [vmem:[#allocation5] sm:$0xff] %vm168_vm0, %v444_v4 }
0x131c   :  { %v635_v5 = vpop.permute.xlu0 %634 }
0x131d   :  { %638 = vst.msk [vmem:[#allocation5 + $0x10] sm:$0xff] %vm168_vm0, %v635_v5 }
0x1321   :  { %v3393_v55 = vpop.eup %3392 }
0x1322   :  { %1013 = vrot.lane.b32.xlu1 %v3393_v55, %s3700_s20 }
0x1324   :  { %v1127_v16 = vld [vmem:[#allocation5 + $0x10] sm:$0xff] }
0x1326   :  { %538 = vrot.lane.b32.xlu1 %v3994_v14, %s3715_s11 }
0x132a   :  { %730 = vrot.lane.b32.xlu1 %v4022_v63, %s3715_s11  ;;  %v1125_v63 = vld [vmem:[#allocation5] sm:$0xff] }
0x1394   :  { %v1014_v9 = vpop.permute.xlu1 %1013 }
0x1395   :  { %v4075_v10 = vmul.f32 %v3391_v61, %v1014_v9 }
0x1397   :  { %v1025_v11 = vpack.c.bf16 %v4075_v10, %v4075_v10 }
0x1398   :  { %v539_v12 = vpop.permute.xlu1 %538 }
0x1399   :  { %542 = vst.msk [vmem:[#allocation5 + $0x8] sm:$0xff] %vm168_vm0, %v539_v12  ;;  %1031 = vrot.lane.b32.xlu0 %v1025_v11, %s3715_s11 }
0x139c   :  { %v731_v14 = vpop.permute.xlu1 %730 }
0x139d   :  { %734 = vst.msk [vmem:[#allocation5 + $0x18] sm:$0xff] %vm168_vm0, %v731_v14  ;;  %1319 = vrot.lane.b32.xlu0 %v1248_v21, %s3715_s11 }
0x13a0   :  { %v1126_v13 = vld [vmem:[#allocation5 + $0x8] sm:$0xff] }
0x13a1   :  { %v1133_v15 = vpack.c.bf16 %v1126_v13, %v1125_v63 }
0x13a3   :  { %3065 = vmatprep.mubr.msk.bf16.mxu1 %vm168_vm0, %v1133_v15 }
0x13a4   :  { %v1128_v17 = vld [vmem:[#allocation5 + $0x18] sm:$0xff] }
0x13a5   :  { %v1134_v24 = vpack.c.bf16 %v1128_v17, %v1127_v16 }
0x13a7   :  { %3066 = vmatmul.mubr.msk.bf16.vlgmr.msra.gmra.mrb[28].mxu1 %vm168_vm0, %v1134_v24 }
0x13a8   :  { %3090 = vmatpush3.bf16.msra.mxu1 %v4086_v18 }
0x13a9   :  { %3091 = vmatprep.subr.bf16.mxu1 %v3713_v0 }
0x13ac   :  { %3092 = vmatpush3.bf16.msra.mxu1 %v4094_v19 }
0x13ad   :  { %3105 = vmatprep.subr.bf16.mxu1 %v3713_v0 }
0x140b   :  { %v1032_v23 = vpop.permute.xlu0 %1031 }
0x140c   :  { %3058 = vmatmul.mubr.msk.bf16.vlgmr.msra.gmra.mrb[8].mxu0 %vm168_vm0, %v1032_v23 }
0x140d   :  { %3074 = vmatpush3.bf16.msra.mxu0 %v4086_v18  ;;  %3077 = vmatprep.mubr.msk.bf16.mxu0 %vm3714_vm1, %v3713_v0 }
0x140e   :  { %3075 = vmatprep.subr.bf16.mxu0 %v3713_v0 }
0x140f   :  { %v1320_v53 = vpop.permute.xlu0 %1319 }
0x1411   :  { %3076 = vmatpush3.bf16.msra.mxu0 %v4094_v19 }
0x1412   :  { %3081 = vmatprep.subr.bf16.mxu0 %v3713_v0 }
0x1414   :  { %3078 = vmatmul.mubr.msk.bf16.vlgmr.msra.gmra.mrb[12].mxu0 %vm168_vm0, %v1250_v28 }
0x1415   :  { %3082 = vmatpush3.bf16.msra.mxu0 %v4086_v18  ;;  %3085 = vmatprep.mubr.msk.bf16.mxu0 %vm3714_vm1, %v3713_v0 }
0x1416   :  { %3083 = vmatprep.subr.bf16.mxu0 %v3713_v0 }
0x1419   :  { %3084 = vmatpush3.bf16.msra.mxu0 %v4094_v19 }
0x141a   :  { %3097 = vmatprep.subr.bf16.mxu0 %v3713_v0 }
0x147a   :  { %v4113_v30 = vpop.f32.mrb[28].mxu1 }
0x147b   :  { %v1206_v32 = vpop.f32.mrb[29].mxu1 }
0x147c   :  { %v4115_v33 = vpop.f32.mrb[30].mxu1  ;;  %v1207_v40 = vadd.f32 %v4120_v39, %v1206_v32 }
0x147d   :  { %v4117_v34 = vpop.f32.mrb[31].mxu1 }
0x147e   :  { %v1210_v12 = vadd.f32 %v4120_v39, %v4117_v34 }
0x14df   :  { %v1082_v35 = vpop.f32.mrb[8].mxu0 }
0x14e0   :  { %v1088_v36 = vadd.f32 %v1082_v35, %v3969_v27  ;;  %v3059_v22 = vpop.f32.mrb[9].mxu0 }
0x14e1   :  { %v1085_v37 = vpop.f32.mrb[10].mxu0 }
0x14e2   :  { %v3060_v38 = vpop.f32.mrb[11].mxu0  ;;  %v2768_v59 = vmul.f32 -1.442695, %v1088_v36 }
0x14e7   :  { %v1304_v42 = vpop.f32.mrb[12].mxu0 }
0x14e8   :  { %v1310_v43 = vadd.f32 %v1304_v42, %v1207_v40  ;;  %v3079_v44 = vpop.f32.mrb[13].mxu0 }
0x14e9   :  { %v1307_v31 = vpop.f32.mrb[14].mxu0 }
0x14ea   :  { %3394 = vtanh.f32 %v1310_v43  ;;  %v3080_v45 = vpop.f32.mrb[15].mxu0  ;;  %v2779_v47 = vmul.f32 -1.442695, %v1310_v43 }
0x14ec   :  { %3396 = vpow2.f32 %v2779_v47 }
0x14f4   :  { %v3395_v46 = vpop.eup %3394 }
0x14f5   :  { %1324 = vrot.lane.b32.xlu1 %v3395_v46, %s3700_s20 }
0x14f6   :  { %v3397_v48 = vpop.eup %3396 }
0x14f7   :  { %v1314_v27 = vadd.f32 1.0, %v3397_v48 }
0x14f9   :  { %3398 = vrcp.f32 %v1314_v27 }
0x1503   :  { %v3399_v50 = vpop.eup %3398 }
0x1504   :  { %v1322_v54 = vmul.f32 %v3399_v50, %v1320_v53 }
0x1567   :  { %v1325_v51 = vpop.permute.xlu1 %1324 }
0x1568   :  { %v1327_v52 = vmul.f32 %v3399_v50, %v1325_v51 }
0x156a   :  { %1329 = vrot.lane.b32.xlu1 %v1327_v52, %s3715_s11  ;;  %v1215_v52 = vadd.f32 %v4113_v30, %v4120_v39 }
0x15dc   :  { %v1330_v56 = vpop.permute.xlu1 %1329 }
0x15dd   :  { %v1332_v57 = vadd.f32 %v1330_v56, %v1322_v54 }
0x15df   :  { %3400 = vtanh.f32 %v1332_v57 }
0x15e0   :  { %3402 = vtanh.f32 %v1088_v36 }
0x15e1   :  { %3404 = vpow2.f32 %v2768_v59 }
0x15e9   :  { %v3401_v58 = vpop.eup %3400 }
0x15ea   :  { %1335 = vrot.lane.b32.xlu0 %v3401_v58, %s3700_s20  ;;  %v3403_v29 = vpop.eup %3402 }
0x15eb   :  { %v3405_v60 = vpop.eup %3404 }
0x15ec   :  { %v1092_v61 = vadd.f32 1.0, %v3405_v60 }
0x15ee   :  { %1098 = vrot.lane.b32.xlu0 %v3403_v29, %s3700_s20  ;;  %3406 = vrcp.f32 %v1092_v61 }
0x15f8   :  { %v3407_v2 = vpop.eup %3406 }
0x15f9   :  { %v1096_v7 = vmul.f32 %v3407_v2, %v4062_v3 }
0x165c   :  { %v1336_v62 = vpop.permute.xlu0 %1335 }
0x165d   :  { %v1338_v1 = vmul.f32 %v3399_v50, %v1336_v62 }
0x165f   :  { %v1340_v20 = vpack.c.bf16 %v1338_v1, %v1338_v1 }
0x1660   :  { %v1099_v4 = vpop.permute.xlu0 %1098 }
0x1661   :  { %v1101_v5 = vmul.f32 %v3407_v2, %v1099_v4  ;;  %1342 = vrot.lane.b32.xlu1 %v1340_v20, %s3715_s11 }
0x1663   :  { %1103 = vrot.lane.b32.xlu0 %v1101_v5, %s3715_s11 }
0x16d3   :  { %v1343_v6 = vpop.permute.xlu1 %1342 }
0x16d4   :  { %3086 = vmatmul.mubr.msk.bf16.vlgmr.msra.gmra.mrb[16].mxu0 %vm168_vm0, %v1343_v6 }
0x16d5   :  { %v1104_v55 = vpop.permute.xlu0 %1103  ;;  %3098 = vmatpush3.bf16.msra.mxu0 %v4086_v18  ;;  %3101 = vmatprep.mubr.msk.bf16.mxu0 %vm3714_vm1, %v3713_v0 }
0x16d6   :  { %v4134_v41 = vadd.f32 %v1104_v55, %v1096_v7  ;;  %3099 = vmatprep.subr.bf16.mxu0 %v3713_v0 }
0x16d8   :  { %3408 = vtanh.f32 %v4134_v41 }
0x16d9   :  { %3100 = vmatpush3.bf16.msra.mxu0 %v4094_v19 }
0x16da   :  { %3113 = vmatprep.subr.bf16.mxu0 %v3713_v0 }
0x16e2   :  { %v3409_v8 = vpop.eup %3408 }
0x16e3   :  { %1109 = vrot.lane.b32.xlu0 %v3409_v8, %s3700_s20 }
0x16e7   :  { %826 = vrot.lane.b32.xlu0 %v4036_v25, %s3715_s11 }
0x16eb   :  { %1018 = vrot.lane.b32.xlu0 %v4075_v10, %s3715_s11 }
0x1755   :  { %v1110_v3 = vpop.permute.xlu0 %1109 }
0x1756   :  { %v1112_v36 = vmul.f32 %v3407_v2, %v1110_v3  ;;  %v1218_v3 = vadd.f32 %v4115_v33, %v4120_v39 }
0x1759   :  { %v827_v9 = vpop.permute.xlu0 %826 }
0x175a   :  { %830 = vst.msk [vmem:[#allocation5 + $0x20] sm:$0xff] %vm168_vm0, %v827_v9 }
0x175d   :  { %v1019_v11 = vpop.permute.xlu0 %1018 }
0x175e   :  { %1022 = vst.msk [vmem:[#allocation5 + $0x30] sm:$0xff] %vm168_vm0, %v1019_v11 }
0x1761   :  { %v1129_v43 = vld [vmem:[#allocation5 + $0x20] sm:$0xff] }
0x17a7   :  { %v1381_v14 = vpop.f32.mrb[16].mxu0 }
0x17a8   :  { %v1387_v63 = vadd.f32 %v1381_v14, %v1210_v12  ;;  %v3087_v13 = vpop.f32.mrb[17].mxu0 }
0x17a9   :  { %v1384_v15 = vpop.f32.mrb[18].mxu0 }
0x17aa   :  { %3410 = vtanh.f32 %v1387_v63  ;;  %v3088_v16 = vpop.f32.mrb[19].mxu0  ;;  %v2781_v10 = vmul.f32 -1.442695, %v1387_v63 }
0x17ac   :  { %3412 = vpow2.f32 %v2781_v10 }
0x17b4   :  { %v3411_v25 = vpop.eup %3410 }
0x17b5   :  { %1397 = vrot.lane.b32.xlu1 %v3411_v25, %s3700_s20 }
0x17b6   :  { %v3413_v17 = vpop.eup %3412 }
0x17b7   :  { %v1391_v24 = vadd.f32 1.0, %v3413_v17 }
0x17b9   :  { %3414 = vrcp.f32 %v1391_v24 }
0x17c3   :  { %v3415_v21 = vpop.eup %3414 }
0x17c4   :  { %v1395_v28 = vmul.f32 %v3415_v21, %v1332_v57 }
0x1827   :  { %v1398_v23 = vpop.permute.xlu1 %1397 }
0x1828   :  { %v1400_v26 = vmul.f32 %v3415_v21, %v1398_v23 }
0x182a   :  { %1402 = vrot.lane.b32.xlu1 %v1400_v26, %s3715_s11 }
0x189c   :  { %v1403_v32 = vpop.permute.xlu1 %1402 }
0x189d   :  { %v1405_v34 = vadd.f32 %v1403_v32, %v1395_v28 }
0x189f   :  { %3416 = vtanh.f32 %v1405_v34 }
0x18a9   :  { %v3417_v35 = vpop.eup %3416 }
0x18aa   :  { %1408 = vrot.lane.b32.xlu1 %v3417_v35, %s3700_s20 }
0x18ae   :  { %922 = vrot.lane.b32.xlu1 %v4049_v49, %s3715_s11  ;;  %v1131_v49 = vld [vmem:[#allocation5 + $0x30] sm:$0xff] }
0x18b2   :  { %1114 = vrot.lane.b32.xlu1 %v1112_v36, %s3715_s11 }
0x191c   :  { %v1409_v22 = vpop.permute.xlu1 %1408 }
0x191d   :  { %v1411_v37 = vmul.f32 %v3415_v21, %v1409_v22 }
0x191f   :  { %v1413_v38 = vpack.c.bf16 %v1411_v37, %v1411_v37 }
0x1920   :  { %v923_v40 = vpop.permute.xlu1 %922 }
0x1921   :  { %926 = vst.msk [vmem:[#allocation5 + $0x28] sm:$0xff] %vm168_vm0, %v923_v40  ;;  %1415 = vrot.lane.b32.xlu0 %v1413_v38, %s3715_s11 }
0x1924   :  { %v1115_v42 = vpop.permute.xlu1 %1114 }
0x1925   :  { %1118 = vst.msk [vmem:[#allocation5 + $0x38] sm:$0xff] %vm168_vm0, %v1115_v42  ;;  %1119 = vst.msk [vmem:[#allocation2] sm:$0xff] %vm168_vm0, %v1115_v42 }
0x1928   :  { %v1130_v44 = vld [vmem:[#allocation5 + $0x28] sm:$0xff] }
0x1929   :  { %v1135_v31 = vpack.c.bf16 %v1130_v44, %v1129_v43 }
0x192b   :  { %3069 = vmatprep.mubr.msk.bf16.mxu1 %vm168_vm0, %v1135_v31 }
0x192c   :  { %v1132_v45 = vld [vmem:[#allocation5 + $0x38] sm:$0xff] }
0x192d   :  { %v1136_v46 = vpack.c.bf16 %v1132_v45, %v1131_v49 }
0x192f   :  { %3070 = vmatmul.mubr.msk.bf16.gmra.mrb[32].mxu1 %vm168_vm0, %v1136_v46 }
0x1930   :  { %3093 = vmatprep.mubr.msk.bf16.mxu1 %vm3714_vm1, %v3713_v0 }
0x1993   :  { %v1416_v47 = vpop.permute.xlu0 %1415 }
0x1994   :  { %3094 = vmatmul.mubr.msk.bf16.vlgmr.msra.gmra.mrb[36].mxu1 %vm168_vm0, %v1416_v47 }
0x1995   :  { %3106 = vmatpush3.bf16.msra.mxu1 %v4086_v18  ;;  %3109 = vmatprep.mubr.msk.bf16.mxu1 %vm3714_vm1, %v3713_v0 }
0x1996   :  { %3107 = vmatprep.subr.bf16.mxu1 %v3713_v0 }
0x1999   :  { %3108 = vmatpush3.bf16.msra.mxu1 %v4094_v19 }
0x199a   :  { %3121 = vmatprep.subr.bf16.mxu1 %v3713_v0 }
0x1a02   :  { %v4170_v48 = vpop.f32.mrb[32].mxu1 }
0x1a03   :  { %v4172_v27 = vpop.f32.mrb[33].mxu1 }
0x1a04   :  { %v4174_v50 = vpop.f32.mrb[34].mxu1  ;;  %v1223_v36 = vadd.f32 %v4120_v39, %v4172_v27 }
0x1a05   :  { %v4176_v51 = vpop.f32.mrb[35].mxu1 }
0x1a67   :  { %v1454_v53 = vpop.f32.mrb[36].mxu1 }
0x1a68   :  { %v1460_v54 = vadd.f32 %v1454_v53, %v1215_v52  ;;  %v3095_v56 = vpop.f32.mrb[37].mxu1 }
0x1a69   :  { %v1457_v57 = vpop.f32.mrb[38].mxu1 }
0x1a6a   :  { %3418 = vtanh.f32 %v1460_v54  ;;  %v3096_v58 = vpop.f32.mrb[39].mxu1  ;;  %v2783_v59 = vmul.f32 -1.442695, %v1460_v54 }
0x1a6c   :  { %3420 = vpow2.f32 %v2783_v59  ;;  %v1226_v59 = vadd.f32 %v4120_v39, %v4176_v51 }
0x1a74   :  { %v3419_v29 = vpop.eup %3418 }
0x1a75   :  { %1470 = vrot.lane.b32.xlu1 %v3419_v29, %s3700_s20 }
0x1a76   :  { %v3421_v60 = vpop.eup %3420 }
0x1a77   :  { %v1464_v61 = vadd.f32 1.0, %v3421_v60 }
0x1a79   :  { %3422 = vrcp.f32 %v1464_v61 }
0x1a83   :  { %v3423_v62 = vpop.eup %3422 }
0x1a84   :  { %v1468_v30 = vmul.f32 %v3423_v62, %v1405_v34 }
0x1ae7   :  { %v1471_v1 = vpop.permute.xlu1 %1470 }
0x1ae8   :  { %v1473_v20 = vmul.f32 %v3423_v62, %v1471_v1 }
0x1aea   :  { %1475 = vrot.lane.b32.xlu0 %v1473_v20, %s3715_s11 }
0x1b5c   :  { %v1476_v2 = vpop.permute.xlu0 %1475 }
0x1b5d   :  { %v1478_v4 = vadd.f32 %v1476_v2, %v1468_v30 }
0x1b5f   :  { %3424 = vtanh.f32 %v1478_v4 }
0x1b69   :  { %v3425_v5 = vpop.eup %3424 }
0x1b6a   :  { %1481 = vrot.lane.b32.xlu1 %v3425_v5, %s3700_s20 }
0x1bdc   :  { %v1482_v6 = vpop.permute.xlu1 %1481 }
0x1bdd   :  { %v1484_v7 = vmul.f32 %v3423_v62, %v1482_v6 }
0x1bdf   :  { %v1486_v55 = vpack.c.bf16 %v1484_v7, %v1484_v7 }
0x1be1   :  { %1488 = vrot.lane.b32.xlu0 %v1486_v55, %s3715_s11 }
0x1c53   :  { %v1489_v8 = vpop.permute.xlu0 %1488 }
0x1c54   :  { %3102 = vmatmul.mubr.msk.bf16.vlgmr.msra.gmra.mrb[20].mxu0 %vm168_vm0, %v1489_v8 }
0x1c55   :  { %3114 = vmatpush3.bf16.msra.mxu0 %v4086_v18  ;;  %3117 = vmatprep.mubr.msk.bf16.mxu0 %vm3714_vm1, %v3713_v0 }
0x1c56   :  { %3115 = vmatprep.subr.bf16.mxu0 %v3713_v0 }
0x1c59   :  { %3116 = vmatpush3.bf16.msra.mxu0 %v4094_v19 }
0x1c5a   :  { %3129 = vmatprep.subr.bf16.mxu0 %v3713_v0 }
0x1d27   :  { %v1527_v9 = vpop.f32.mrb[20].mxu0 }
0x1d28   :  { %v1533_v11 = vadd.f32 %v1527_v9, %v1218_v3  ;;  %v3103_v12 = vpop.f32.mrb[21].mxu0 }
0x1d29   :  { %v1530_v14 = vpop.f32.mrb[22].mxu0  ;;  %v1231_v12 = vadd.f32 %v4170_v48, %v4120_v39 }
0x1d2a   :  { %3426 = vtanh.f32 %v1533_v11  ;;  %v3104_v63 = vpop.f32.mrb[23].mxu0  ;;  %v2785_v15 = vmul.f32 -1.442695, %v1533_v11 }
0x1d2c   :  { %3428 = vpow2.f32 %v2785_v15 }
0x1d34   :  { %v3427_v13 = vpop.eup %3426 }
0x1d35   :  { %1543 = vrot.lane.b32.xlu1 %v3427_v13, %s3700_s20 }
0x1d36   :  { %v3429_v16 = vpop.eup %3428 }
0x1d37   :  { %v1537_v25 = vadd.f32 1.0, %v3429_v16 }
0x1d39   :  { %3430 = vrcp.f32 %v1537_v25 }
0x1d43   :  { %v3431_v10 = vpop.eup %3430 }
0x1d44   :  { %v1541_v33 = vmul.f32 %v3431_v10, %v1478_v4 }
0x1da7   :  { %v1544_v17 = vpop.permute.xlu1 %1543 }
0x1da8   :  { %v1546_v24 = vmul.f32 %v3431_v10, %v1544_v17 }
0x1daa   :  { %1548 = vrot.lane.b32.xlu0 %v1546_v24, %s3715_s11 }
0x1e1c   :  { %v1549_v21 = vpop.permute.xlu0 %1548 }
0x1e1d   :  { %v1551_v23 = vadd.f32 %v1549_v21, %v1541_v33 }
0x1e1f   :  { %3432 = vtanh.f32 %v1551_v23 }
0x1e29   :  { %v3433_v26 = vpop.eup %3432 }
0x1e2a   :  { %1554 = vrot.lane.b32.xlu1 %v3433_v26, %s3700_s20 }
0x1e9c   :  { %v1555_v28 = vpop.permute.xlu1 %1554 }
0x1e9d   :  { %v1557_v32 = vmul.f32 %v3431_v10, %v1555_v28 }
0x1e9f   :  { %v1559_v34 = vpack.c.bf16 %v1557_v32, %v1557_v32 }
0x1ea1   :  { %1561 = vrot.lane.b32.xlu0 %v1559_v34, %s3715_s11 }
0x1f13   :  { %v1562_v35 = vpop.permute.xlu0 %1561 }
0x1f14   :  { %3110 = vmatmul.mubr.msk.bf16.vlgmr.msra.gmra.mrb[40].mxu1 %vm168_vm0, %v1562_v35 }
0x1f15   :  { %3122 = vmatpush3.bf16.msra.mxu1 %v4086_v18  ;;  %3125 = vmatprep.mubr.msk.bf16.mxu1 %vm3714_vm1, %v3713_v0 }
0x1f16   :  { %3123 = vmatprep.subr.bf16.mxu1 %v3713_v0 }
0x1f19   :  { %3124 = vmatpush3.bf16.msra.mxu1 %v4094_v19 }
0x1fe7   :  { %v1600_v22 = vpop.f32.mrb[40].mxu1 }
0x1fe8   :  { %v1606_v37 = vadd.f32 %v1600_v22, %v1223_v36  ;;  %v3111_v38 = vpop.f32.mrb[41].mxu1 }
0x1fe9   :  { %v1603_v40 = vpop.f32.mrb[42].mxu1 }
0x1fea   :  { %3434 = vtanh.f32 %v1606_v37  ;;  %v3112_v42 = vpop.f32.mrb[43].mxu1  ;;  %v2787_v44 = vmul.f32 -1.442695, %v1606_v37  ;;  %v1234_v37 = vadd.f32 %v4174_v50, %v4120_v39 }
0x1fec   :  { %3436 = vpow2.f32 %v2787_v44 }
0x1ff4   :  { %v3435_v43 = vpop.eup %3434 }
0x1ff5   :  { %1616 = vrot.lane.b32.xlu1 %v3435_v43, %s3700_s20 }
0x1ff6   :  { %v3437_v31 = vpop.eup %3436 }
0x1ff7   :  { %v1610_v49 = vadd.f32 1.0, %v3437_v31 }
0x1ff9   :  { %3438 = vrcp.f32 %v1610_v49 }
0x2003   :  { %v3439_v45 = vpop.eup %3438 }
0x2004   :  { %v1614_v27 = vmul.f32 %v3439_v45, %v1551_v23 }
0x2067   :  { %v1617_v46 = vpop.permute.xlu1 %1616 }
0x2068   :  { %v1619_v47 = vmul.f32 %v3439_v45, %v1617_v46 }
0x206a   :  { %1621 = vrot.lane.b32.xlu0 %v1619_v47, %s3715_s11 }
0x20dc   :  { %v1622_v52 = vpop.permute.xlu0 %1621 }
0x20dd   :  { %v1624_v53 = vadd.f32 %v1622_v52, %v1614_v27 }
0x20df   :  { %3440 = vtanh.f32 %v1624_v53 }
0x20e9   :  { %v3441_v54 = vpop.eup %3440 }
0x20ea   :  { %1627 = vrot.lane.b32.xlu1 %v3441_v54, %s3700_s20 }
0x215c   :  { %v1628_v56 = vpop.permute.xlu1 %1627 }
0x215d   :  { %v1630_v57 = vmul.f32 %v3439_v45, %v1628_v56  ;;  %v3214_v56 = vld [vmem:[#allocation17] ss:$16 sps:$4 sm:$0xff]  }
0x215f   :  { %v1632_v58 = vpack.c.bf16 %v1630_v57, %v1630_v57  ;;  %v3216_v57 = vld [vmem:[#allocation17 + $0x4] ss:$16 sps:$4 sm:$0xff]  }
0x2160   :  { %1939 = vmatprep.subr.bf16.mxu1 %v3216_v57  ;;  %v3300_v57 = vld [vmem:[#allocation18 + $0xc4] ss:$8 sps:$4 sm:$0xff]  }
0x2161   :  { %1634 = vrot.lane.b32.xlu0 %v1632_v58, %s3715_s11  ;;  %v3217_v58 = vld [vmem:[#allocation17 + $0x8] ss:$16 sps:$4 sm:$0xff]  }
0x21d3   :  { %v1635_v29 = vpop.permute.xlu0 %1634 }
0x21d4   :  { %3118 = vmatmul.mubr.msk.bf16.vlgmr.msra.gmra.mrb[24].mxu0 %vm168_vm0, %v1635_v29  ;;  %v3219_v29 = vld [vmem:[#allocation17 + $0xc] ss:$16 sps:$4 sm:$0xff]  }
0x21d5   :  { %3130 = vmatpush3.bf16.msra.mxu0 %v4086_v18  ;;  %3133 = vmatprep.mubr.msk.bf16.mxu0 %vm3714_vm1, %v3713_v0 }
0x21d6   :  { %3131 = vmatprep.subr.bf16.mxu0 %v3713_v0 }
0x21d9   :  { %3132 = vmatpush3.bf16.msra.mxu0 %v4094_v19 }
0x21da   :  { %1982 = vmatprep.subr.bf16.mxu0 %v3219_v29  ;;  %v3298_v29 = vld [vmem:[#allocation18 + $0xc0] ss:$8 sps:$4 sm:$0xff]  }
0x22a7   :  { %v1673_v60 = vpop.f32.mrb[24].mxu0 }
0x22a8   :  { %v1679_v61 = vadd.f32 %v1673_v60, %v1226_v59  ;;  %v3119_v62 = vpop.f32.mrb[25].mxu0  ;;  %v3220_v59 = vld [vmem:[#allocation17 + $0x20] ss:$16 sps:$4 sm:$0xff]   ;;  %v3222_v60 = vld [vmem:[#allocation17 + $0x24] ss:$16 sps:$4 sm:$0xff]  }
0x22a9   :  { %v1676_v1 = vpop.f32.mrb[26].mxu0  ;;  %v3225_v62 = vld [vmem:[#allocation17 + $0x2c] ss:$16 sps:$4 sm:$0xff]  }
0x22aa   :  { %3442 = vtanh.f32 %v1679_v61  ;;  %v3120_v20 = vpop.f32.mrb[27].mxu0  ;;  %v2789_v18 = vmul.f32 -1.442695, %v1679_v61  ;;  %v3223_v61 = vld [vmem:[#allocation17 + $0x28] ss:$16 sps:$4 sm:$0xff]   ;;  %v3717_v1 = vmov 0  }
0x22ab   :  { %v3228_v20 = vld [vmem:[#allocation18 + $0x4] ss:$8 sps:$4 sm:$0xff]  }
0x22ac   :  { %3444 = vpow2.f32 %v2789_v18  ;;  %v3231_v18 = vld [vmem:[#allocation18 + $0x104] ss:$8 sps:$4 sm:$0xff]  }
0x22b4   :  { %v3443_v30 = vpop.eup %3442 }
0x22b5   :  { %1689 = vrot.lane.b32.xlu1 %v3443_v30, %s3700_s20 }
0x22b6   :  { %v3445_v2 = vpop.eup %3444 }
0x22b7   :  { %v1683_v4 = vadd.f32 1.0, %v3445_v2 }
0x22b9   :  { %3446 = vrcp.f32 %v1683_v4 }
0x22c3   :  { %v3447_v0 = vpop.eup %3446 }
0x22c4   :  { %v1687_v51 = vmul.f32 %v3447_v0, %v1624_v53 }
0x2327   :  { %v1690_v5 = vpop.permute.xlu1 %1689 }
0x2328   :  { %v1692_v19 = vmul.f32 %v3447_v0, %v1690_v5  ;;  %v1863_v5 = vld [vmem:[#allocation2] sm:$0xff] }
0x232a   :  { %1694 = vrot.lane.b32.xlu0 %v1692_v19, %s3715_s11 }
0x239c   :  { %v1695_v6 = vpop.permute.xlu0 %1694 }
0x239d   :  { %v1697_v7 = vadd.f32 %v1695_v6, %v1687_v51  ;;  %v3226_v51 = vld [vmem:[#allocation18] ss:$8 sps:$4 sm:$0xff]  }
0x239e   :  { %v3229_v6 = vld [vmem:[#allocation18 + $0x100] ss:$8 sps:$4 sm:$0xff]  }
0x239f   :  { %3448 = vtanh.f32 %v1697_v7 }
0x23a9   :  { %v3449_v55 = vpop.eup %3448 }
0x23aa   :  { %1700 = vrot.lane.b32.xlu1 %v3449_v55, %s3700_s20  ;;  %v3234_v55 = vld [vmem:[#allocation18 + $0x14] ss:$8 sps:$4 sm:$0xff]  }
0x241c   :  { %v1701_v8 = vpop.permute.xlu1 %1700 }
0x241d   :  { %v1703_v3 = vmul.f32 %v3447_v0, %v1701_v8  ;;  %v3237_v8 = vld [vmem:[#allocation18 + $0x114] ss:$8 sps:$4 sm:$0xff]  }
0x241f   :  { %v1705_v9 = vpack.c.bf16 %v1703_v3, %v1703_v3  ;;  %v3232_v3 = vld [vmem:[#allocation18 + $0x10] ss:$8 sps:$4 sm:$0xff]  }
0x2421   :  { %1707 = vrot.lane.b32.xlu0 %v1705_v9, %s3715_s11  ;;  %v3235_v9 = vld [vmem:[#allocation18 + $0x110] ss:$8 sps:$4 sm:$0xff]  }
0x2493   :  { %v1708_v11 = vpop.permute.xlu0 %1707 }
0x2494   :  { %3126 = vmatmul.mubr.msk.bf16.vlgmr.msra.gmra.mrb[44].mxu1 %vm168_vm0, %v1708_v11  ;;  %v3240_v11 = vld [vmem:[#allocation18 + $0x24] ss:$8 sps:$4 sm:$0xff]  }
0x2495   :  { %1940 = vmatpush1.bf16.msra.mxu1 %v3214_v56  ;;  %1971 = vmatprep.mubr.bf16.mxu1 %v3717_v1  ;;  %v3295_v56 = vld [vmem:[#allocation18 + $0x1b0] ss:$8 sps:$4 sm:$0xff]  }
0x2496   :  { %1941 = vmatprep.subr.bf16.mxu1 %v3222_v60  ;;  %v3306_v60 = vld [vmem:[#allocation18 + $0xd4] ss:$8 sps:$4 sm:$0xff]  }
0x2499   :  { %1942 = vmatpush1.bf16.msra.mxu1 %v3220_v59  ;;  %v3301_v59 = vld [vmem:[#allocation18 + $0x1c0] ss:$8 sps:$4 sm:$0xff]  }
0x249a   :  { %2476 = vmatprep.subr.bf16.mxu1 %v3231_v18  ;;  %v3313_v18 = vld [vmem:[#allocation18 + $0x1e0] ss:$8 sps:$4 sm:$0xff]  }
0x2567   :  { %v1746_v14 = vpop.f32.mrb[44].mxu1 }
0x2568   :  { %v1752_v63 = vadd.f32 %v1746_v14, %v1231_v12  ;;  %v3127_v13 = vpop.f32.mrb[45].mxu1  ;;  %v3243_v12 = vld [vmem:[#allocation18 + $0x124] ss:$8 sps:$4 sm:$0xff]   ;;  %v3238_v14 = vld [vmem:[#allocation18 + $0x20] ss:$8 sps:$4 sm:$0xff]  }
0x2569   :  { %v1749_v15 = vpop.f32.mrb[46].mxu1  ;;  %v3246_v13 = vld [vmem:[#allocation18 + $0x34] ss:$8 sps:$4 sm:$0xff]  }
0x256a   :  { %3450 = vtanh.f32 %v1752_v63  ;;  %v3128_v16 = vpop.f32.mrb[47].mxu1  ;;  %v2791_v10 = vmul.f32 -1.442695, %v1752_v63  ;;  %v3241_v63 = vld [vmem:[#allocation18 + $0x120] ss:$8 sps:$4 sm:$0xff]  }
0x256b   :  { %v3249_v15 = vld [vmem:[#allocation18 + $0x134] ss:$8 sps:$4 sm:$0xff]   ;;  %v3244_v16 = vld [vmem:[#allocation18 + $0x30] ss:$8 sps:$4 sm:$0xff]  }
0x256c   :  { %3452 = vpow2.f32 %v2791_v10  ;;  %v3252_v10 = vld [vmem:[#allocation18 + $0x44] ss:$8 sps:$4 sm:$0xff]  }
0x2574   :  { %v3451_v25 = vpop.eup %3450 }
0x2575   :  { %1762 = vrot.lane.b32.xlu1 %v3451_v25, %s3700_s20  ;;  %v3247_v25 = vld [vmem:[#allocation18 + $0x130] ss:$8 sps:$4 sm:$0xff]  }
0x2576   :  { %v3453_v17 = vpop.eup %3452 }
0x2577   :  { %v1756_v24 = vadd.f32 1.0, %v3453_v17  ;;  %v3255_v17 = vld [vmem:[#allocation18 + $0x144] ss:$8 sps:$4 sm:$0xff]  }
0x2579   :  { %3454 = vrcp.f32 %v1756_v24  ;;  %v3250_v24 = vld [vmem:[#allocation18 + $0x40] ss:$8 sps:$4 sm:$0xff]  }
0x2583   :  { %v3455_v33 = vpop.eup %3454 }
0x2584   :  { %v1760_v48 = vmul.f32 %v3455_v33, %v1697_v7 }
0x25e7   :  { %v1763_v21 = vpop.permute.xlu1 %1762 }
0x25e8   :  { %v1765_v23 = vmul.f32 %v3455_v33, %v1763_v21  ;;  %v3258_v21 = vld [vmem:[#allocation18 + $0x54] ss:$8 sps:$4 sm:$0xff]  }
0x25ea   :  { %1767 = vrot.lane.b32.xlu0 %v1765_v23, %s3715_s11  ;;  %v3261_v23 = vld [vmem:[#allocation18 + $0x154] ss:$8 sps:$4 sm:$0xff]  }
0x265c   :  { %v1768_v26 = vpop.permute.xlu0 %1767 }
0x265d   :  { %v1770_v28 = vadd.f32 %v1768_v26, %v1760_v48  ;;  %v3256_v48 = vld [vmem:[#allocation18 + $0x50] ss:$8 sps:$4 sm:$0xff]  }
0x265e   :  { %v3259_v26 = vld [vmem:[#allocation18 + $0x150] ss:$8 sps:$4 sm:$0xff]  }
0x265f   :  { %3456 = vtanh.f32 %v1770_v28 }
0x2669   :  { %v3457_v32 = vpop.eup %3456 }
0x266a   :  { %1773 = vrot.lane.b32.xlu1 %v3457_v32, %s3700_s20  ;;  %v3267_v32 = vld [vmem:[#allocation18 + $0x164] ss:$8 sps:$4 sm:$0xff]  }
0x26dc   :  { %v1774_v34 = vpop.permute.xlu1 %1773 }
0x26dd   :  { %v1776_v35 = vmul.f32 %v3455_v33, %v1774_v34  ;;  %v3253_v33 = vld [vmem:[#allocation18 + $0x140] ss:$8 sps:$4 sm:$0xff]  }
0x26de   :  { %v3262_v34 = vld [vmem:[#allocation18 + $0x60] ss:$8 sps:$4 sm:$0xff]  }
0x26df   :  { %v1778_v36 = vpack.c.bf16 %v1776_v35, %v1776_v35  ;;  %v3265_v35 = vld [vmem:[#allocation18 + $0x160] ss:$8 sps:$4 sm:$0xff]  }
0x26e1   :  { %1780 = vrot.lane.b32.xlu0 %v1778_v36, %s3715_s11  ;;  %v3270_v36 = vld [vmem:[#allocation18 + $0x74] ss:$8 sps:$4 sm:$0xff]  }
0x2753   :  { %v1781_v22 = vpop.permute.xlu0 %1780 }
0x2754   :  { %3134 = vmatmul.mubr.msk.bf16.vlgmr.msra.gmra.mrb[28].mxu0 %vm168_vm0, %v1781_v22  ;;  %v3273_v22 = vld [vmem:[#allocation18 + $0x174] ss:$8 sps:$4 sm:$0xff]  }
0x2755   :  { %1983 = vmatpush1.bf16.msra.mxu0 %v3217_v58  ;;  %2014 = vmatprep.mubr.bf16.mxu0 %v3717_v1  ;;  %v3303_v58 = vld [vmem:[#allocation18 + $0x1c4] ss:$8 sps:$4 sm:$0xff]   ;;  %v3307_v1 = vld [vmem:[#allocation18 + $0x1d0] ss:$8 sps:$4 sm:$0xff]  }
0x2756   :  { %1984 = vmatprep.subr.bf16.mxu0 %v3225_v62  ;;  %v3304_v62 = vld [vmem:[#allocation18 + $0xd0] ss:$8 sps:$4 sm:$0xff]  }
0x2759   :  { %1985 = vmatpush1.bf16.msra.mxu0 %v3223_v61  ;;  %v3309_v61 = vld [vmem:[#allocation18 + $0x1d4] ss:$8 sps:$4 sm:$0xff]  }
0x275a   :  { %2433 = vmatprep.subr.bf16.mxu0 %v3228_v20  ;;  %v3315_v20 = vld [vmem:[#allocation18 + $0x1e4] ss:$8 sps:$4 sm:$0xff]  }
0x2827   :  { %v1819_v38 = vpop.f32.mrb[28].mxu0 }
0x2828   :  { %v1825_v40 = vadd.f32 %v1819_v38, %v1234_v37  ;;  %v3135_v42 = vpop.f32.mrb[29].mxu0  ;;  %v3268_v37 = vld [vmem:[#allocation18 + $0x70] ss:$8 sps:$4 sm:$0xff]  }
0x2829   :  { %v1822_v43 = vpop.f32.mrb[30].mxu0  ;;  %v3271_v38 = vld [vmem:[#allocation18 + $0x170] ss:$8 sps:$4 sm:$0xff]   ;;  %v3279_v42 = vld [vmem:[#allocation18 + $0x184] ss:$8 sps:$4 sm:$0xff]  }
0x282a   :  { %3458 = vtanh.f32 %v1825_v40  ;;  %v3136_v44 = vpop.f32.mrb[31].mxu0  ;;  %v2793_v49 = vmul.f32 -1.442695, %v1825_v40  ;;  %v3276_v40 = vld [vmem:[#allocation18 + $0x84] ss:$8 sps:$4 sm:$0xff]  }
0x282b   :  { %v3274_v43 = vld [vmem:[#allocation18 + $0x80] ss:$8 sps:$4 sm:$0xff]  }
0x282c   :  { %3460 = vpow2.f32 %v2793_v49  ;;  %v3277_v44 = vld [vmem:[#allocation18 + $0x180] ss:$8 sps:$4 sm:$0xff]   ;;  %v3285_v49 = vld [vmem:[#allocation18 + $0x194] ss:$8 sps:$4 sm:$0xff]  }
0x2834   :  { %v3459_v31 = vpop.eup %3458 }
0x2835   :  { %1835 = vrot.lane.b32.xlu1 %v3459_v31, %s3700_s20  ;;  %v3282_v31 = vld [vmem:[#allocation18 + $0x94] ss:$8 sps:$4 sm:$0xff]  }
0x2836   :  { %v3461_v45 = vpop.eup %3460 }
0x2837   :  { %v1829_v46 = vadd.f32 1.0, %v3461_v45  ;;  %v3280_v45 = vld [vmem:[#allocation18 + $0x90] ss:$8 sps:$4 sm:$0xff]  }
0x2839   :  { %3462 = vrcp.f32 %v1829_v46  ;;  %v3283_v46 = vld [vmem:[#allocation18 + $0x190] ss:$8 sps:$4 sm:$0xff]  }
0x2843   :  { %v3463_v47 = vpop.eup %3462 }
0x2844   :  { %v1833_v39 = vmul.f32 %v3463_v47, %v1770_v28  ;;  %v3264_v28 = vld [vmem:[#allocation18 + $0x64] ss:$8 sps:$4 sm:$0xff]  }
0x28a7   :  { %v1836_v27 = vpop.permute.xlu1 %1835 }
0x28a8   :  { %v1838_v52 = vmul.f32 %v3463_v47, %v1836_v27  ;;  %v3291_v27 = vld [vmem:[#allocation18 + $0x1a4] ss:$8 sps:$4 sm:$0xff]  }
0x28aa   :  { %1840 = vrot.lane.b32.xlu0 %v1838_v52, %s3715_s11  ;;  %v3286_v52 = vld [vmem:[#allocation18 + $0xa0] ss:$8 sps:$4 sm:$0xff]  }
0x291c   :  { %v1841_v50 = vpop.permute.xlu0 %1840 }
0x291d   :  { %v1843_v53 = vadd.f32 %v1841_v50, %v1833_v39  ;;  %v3289_v39 = vld [vmem:[#allocation18 + $0x1a0] ss:$8 sps:$4 sm:$0xff]   ;;  %v3294_v50 = vld [vmem:[#allocation18 + $0xb4] ss:$8 sps:$4 sm:$0xff]  }
0x291f   :  { %3464 = vtanh.f32 %v1843_v53 }
0x2929   :  { %v3465_v54 = vpop.eup %3464 }
0x292a   :  { %1846 = vrot.lane.b32.xlu1 %v3465_v54, %s3700_s20  ;;  %v3292_v54 = vld [vmem:[#allocation18 + $0xb0] ss:$8 sps:$4 sm:$0xff]  }
0x292e   :  { %1121 = vrot.lane.b32.xlu1 %v4134_v41, %s3716_s5 }
0x299c   :  { %v1847_v41 = vpop.permute.xlu1 %1846 }
0x299d   :  { %v1849_v30 = vmul.f32 %v3463_v47, %v1847_v41  ;;  %v3288_v47 = vld [vmem:[#allocation18 + $0xa4] ss:$8 sps:$4 sm:$0xff]  }
0x299e   :  { %v3312_v41 = vld [vmem:[#allocation18 + $0xe4] ss:$8 sps:$4 sm:$0xff]  }
0x299f   :  { %1851 = vrot.lane.b32.xlu0 %v1849_v30, %s3715_s11  ;;  %v3310_v30 = vld [vmem:[#allocation18 + $0xe0] ss:$8 sps:$4 sm:$0xff]  }
0x29a0   :  { %v1122_v2 = vpop.permute.xlu1 %1121 }
0x29a1   :  { %1124 = vst.msk [vmem:[#allocation3] sm:$0xff] %vm168_vm0, %v1122_v2  ;;  %v3318_v2 = vld [vmem:[#allocation18 + $0xf4] ss:$8 sps:$4 sm:$0xff]  }
0x29a3   :  { %1856 = vrot.lane.b32.xlu0 %v1843_v53, %s3716_s5  ;;  %v3297_v53 = vld [vmem:[#allocation18 + $0x1b4] ss:$8 sps:$4 sm:$0xff]  }
0x2a11   :  { %v1852_v4 = vpop.permute.xlu0 %1851 }
0x2a12   :  { %1854 = vst.msk [vmem:[#allocation2 + $0x8] sm:$0xff] %vm168_vm0, %v1852_v4  ;;  %v3321_v4 = vld [vmem:[#allocation18 + $0x1f4] ss:$8 sps:$4 sm:$0xff]  }
0x2a15   :  { %v1857_v0 = vpop.permute.xlu0 %1856 }
0x2a16   :  { %1859 = vst.msk [vmem:[#allocation3 + $0x8] sm:$0xff] %vm168_vm0, %v1857_v0  ;;  %v3316_v0 = vld [vmem:[#allocation18 + $0xf0] ss:$8 sps:$4 sm:$0xff]  }
0x2a19   :  { %v1864_v19 = vld [vmem:[#allocation2 + $0x8] sm:$0xff] }
0x2a1a   :  { %v1865_v7 = vpack.c.bf16 %v1864_v19, %v1863_v5  ;;  %v3319_v5 = vld [vmem:[#allocation18 + $0x1f0] ss:$8 sps:$4 sm:$0xff]   ;;  %v3322_v19 = vld [vmem:[#allocation20 + $0x40] sm:$0xff]  }
0x2a1c   :  { %2802 = vmatmul.mubr.msk.bf16.vlgmr.msra.gmra.mrb[48].mxu1 %vm168_vm0, %v1865_v7  ;;  %2803 = vmatmul.mubr.msk.bf16.vlgmr.msra.gmra.mrb[32].mxu0 %vm168_vm0, %v1865_v7 }
0x2a1d   :  { %2434 = vmatpush1.bf16.msra.mxu0 %v3226_v51  ;;  %2477 = vmatpush1.bf16.msra.mxu1 %v3229_v6  ;;  %v1876_v51 = vlaneseq }
0x2a1e   :  { %2435 = vmatprep.subr.bf16.mxu0 %v3234_v55  ;;  %2478 = vmatprep.subr.bf16.mxu1 %v3237_v8  ;;  %v1874_v8 = vld [vmem:[%s4287_s8] sm:$0xf] }
0x2a1f   :  { %v4241_v6 = vshrl.u32 %v1876_v51, 7 }
0x2a21   :  { %2436 = vmatpush1.bf16.msra.mxu0 %v3232_v3  ;;  %2479 = vmatpush1.bf16.msra.mxu1 %v3235_v9  ;;  %v1878_v7 = vsub.s32 0, %v4241_v6  ;;  %v1886_v55 = vsub.s32 2, %v4241_v6  ;;  %v1882_v3 = vsub.s32 1, %v4241_v6  ;;  %v1890_v9 = vsub.s32 3, %v4241_v6 }
0x2a22   :  { %2437 = vmatprep.subr.bf16.mxu0 %v3240_v11  ;;  %2480 = vmatprep.subr.bf16.mxu1 %v3243_v12 }
0x2a23   :  { %v1879_v11 = vrot.slane %v1874_v8, %v1878_v7  ;;  %v1887_v12 = vrot.slane %v1874_v8, %v1886_v55 }
0x2a25   :  { %2438 = vmatpush1.bf16.msra.mxu0 %v3238_v14  ;;  %2481 = vmatpush1.bf16.msra.mxu1 %v3241_v63  ;;  %v1883_v14 = vrot.slane %v1874_v8, %v1882_v3  ;;  %v1891_v63 = vrot.slane %v1874_v8, %v1890_v9 }
0x2a26   :  { %2439 = vmatprep.subr.bf16.mxu0 %v3246_v13  ;;  %2482 = vmatprep.subr.bf16.mxu1 %v3249_v15 }
0x2a29   :  { %2440 = vmatpush1.bf16.msra.mxu0 %v3244_v16  ;;  %2483 = vmatpush1.bf16.msra.mxu1 %v3247_v25 }
0x2a2a   :  { %2441 = vmatprep.subr.bf16.mxu0 %v3252_v10  ;;  %2484 = vmatprep.subr.bf16.mxu1 %v3255_v17 }
0x2a2d   :  { %2442 = vmatpush1.bf16.msra.mxu0 %v3250_v24  ;;  %2485 = vmatpush1.bf16.msra.mxu1 %v3253_v33 }
0x2a2e   :  { %2443 = vmatprep.subr.bf16.mxu0 %v3258_v21  ;;  %2486 = vmatprep.subr.bf16.mxu1 %v3261_v23 }
0x2a31   :  { %2444 = vmatpush1.bf16.msra.mxu0 %v3256_v48  ;;  %2487 = vmatpush1.bf16.msra.mxu1 %v3259_v26 }
0x2a32   :  { %2445 = vmatprep.subr.bf16.mxu0 %v3264_v28  ;;  %2488 = vmatprep.subr.bf16.mxu1 %v3267_v32 }
0x2a35   :  { %2446 = vmatpush1.bf16.msra.mxu0 %v3262_v34  ;;  %2489 = vmatpush1.bf16.msra.mxu1 %v3265_v35 }
0x2a36   :  { %2447 = vmatprep.subr.bf16.mxu0 %v3270_v36  ;;  %2490 = vmatprep.subr.bf16.mxu1 %v3273_v22 }
0x2a39   :  { %2448 = vmatpush1.bf16.msra.mxu0 %v3268_v37  ;;  %2491 = vmatpush1.bf16.msra.mxu1 %v3271_v38 }
0x2a3a   :  { %2449 = vmatprep.subr.bf16.mxu0 %v3276_v40  ;;  %2492 = vmatprep.subr.bf16.mxu1 %v3279_v42 }
0x2a3d   :  { %2450 = vmatpush1.bf16.msra.mxu0 %v3274_v43  ;;  %2493 = vmatpush1.bf16.msra.mxu1 %v3277_v44 }
0x2a3e   :  { %2451 = vmatprep.subr.bf16.mxu0 %v3282_v31  ;;  %2494 = vmatprep.subr.bf16.mxu1 %v3285_v49 }
0x2a41   :  { %2452 = vmatpush1.bf16.msra.mxu0 %v3280_v45  ;;  %2495 = vmatpush1.bf16.msra.mxu1 %v3283_v46 }
0x2a42   :  { %2453 = vmatprep.subr.bf16.mxu0 %v3288_v47  ;;  %2496 = vmatprep.subr.bf16.mxu1 %v3291_v27  ;;  %v3323_v47 = vld [vmem:[#allocation20] sm:$0xff]   ;;  %v3324_v27 = vld [vmem:[#allocation20 + $0x48] sm:$0xff]  }
0x2a45   :  { %2454 = vmatpush1.bf16.msra.mxu0 %v3286_v52  ;;  %2497 = vmatpush1.bf16.msra.mxu1 %v3289_v39  ;;  %v3325_v52 = vld [vmem:[#allocation20 + $0x8] sm:$0xff]   ;;  %v3326_v39 = vld [vmem:[#allocation20 + $0x50] sm:$0xff]  }
0x2a46   :  { %2455 = vmatprep.subr.bf16.mxu0 %v3294_v50  ;;  %2498 = vmatprep.subr.bf16.mxu1 %v3297_v53  ;;  %v3327_v50 = vld [vmem:[#allocation20 + $0x10] sm:$0xff]   ;;  %v3328_v53 = vld [vmem:[#allocation20 + $0x58] sm:$0xff]  }
0x2a49   :  { %2456 = vmatpush1.bf16.msra.mxu0 %v3292_v54  ;;  %2499 = vmatpush1.bf16.msra.mxu1 %v3295_v56  ;;  %v3329_v54 = vld [vmem:[#allocation20 + $0x18] sm:$0xff]   ;;  %v3330_v56 = vld [vmem:[#allocation20 + $0x60] sm:$0xff]  }
0x2a4a   :  { %2457 = vmatprep.subr.bf16.mxu0 %v3300_v57  ;;  %2500 = vmatprep.subr.bf16.mxu1 %v3303_v58  ;;  %v3331_v57 = vld [vmem:[#allocation20 + $0x20] sm:$0xff]   ;;  %v3332_v58 = vld [vmem:[#allocation20 + $0x68] sm:$0xff]  }
0x2a4d   :  { %2458 = vmatpush1.bf16.msra.mxu0 %v3298_v29  ;;  %2501 = vmatpush1.bf16.msra.mxu1 %v3301_v59  ;;  %v3333_v29 = vld [vmem:[#allocation20 + $0x28] sm:$0xff]   ;;  %v3334_v59 = vld [vmem:[#allocation20 + $0x70] sm:$0xff]  }
0x2a4e   :  { %2459 = vmatprep.subr.bf16.mxu0 %v3306_v60  ;;  %2502 = vmatprep.subr.bf16.mxu1 %v3309_v61  ;;  %v3335_v60 = vld [vmem:[#allocation20 + $0x30] sm:$0xff]   ;;  %v3336_v61 = vld [vmem:[#allocation20 + $0x78] sm:$0xff]  }
0x2a51   :  { %2460 = vmatpush1.bf16.msra.mxu0 %v3304_v62  ;;  %2503 = vmatpush1.bf16.msra.mxu1 %v3307_v1  ;;  %v3337_v62 = vld [vmem:[#allocation20 + $0x38] sm:$0xff]  }
0x2a52   :  { %2461 = vmatprep.subr.bf16.mxu0 %v3312_v41  ;;  %2504 = vmatprep.subr.bf16.mxu1 %v3315_v20  ;;  %v2101_v1 = vld [vmem:[%s4289_s10] sm:$0x3] }
0x2a53   :  { %v2106_v41 = vrot.slane %v2101_v1, %v1878_v7  ;;  %v2110_v20 = vrot.slane %v2101_v1, %v1882_v3 }
0x2a55   :  { %2462 = vmatpush1.bf16.msra.mxu0 %v3310_v30  ;;  %2505 = vmatpush1.bf16.msra.mxu1 %v3313_v18 }
0x2a56   :  { %2463 = vmatprep.subr.bf16.mxu0 %v3318_v2  ;;  %2506 = vmatprep.subr.bf16.mxu1 %v3321_v4 }
0x2a59   :  { %2464 = vmatpush1.bf16.msra.mxu0 %v3316_v0  ;;  %2507 = vmatpush1.bf16.msra.mxu1 %v3319_v5 }
0x2a5a   :  { %2951 = vmatprep.subr.bf16.mxu0 %v3322_v19 }
0x2aef   :  { %v1973_v13 = vpop.f32.mrb[48].mxu1  ;;  %v2016_v15 = vpop.f32.mrb[32].mxu0 }
0x2af0   :  { %v1974_v16 = vadd.f32 %v1973_v13, %v1879_v11  ;;  %v2017_v25 = vadd.f32 %v2016_v15, %v1887_v12  ;;  %v1975_v10 = vpop.f32.mrb[49].mxu1  ;;  %v2018_v17 = vpop.f32.mrb[33].mxu0 }
0x2af1   :  { %v1976_v24 = vadd.f32 %v1975_v10, %v1883_v14  ;;  %v2019_v33 = vadd.f32 %v2018_v17, %v1891_v63  ;;  %v1977_v21 = vpop.f32.mrb[50].mxu1  ;;  %v2020_v23 = vpop.f32.mrb[34].mxu0  ;;  %v2868_v17 = vld [vmem:[%s4291_s12] ss:$0 sm:$0xff] }
0x2af2   :  { %v1978_v48 = vadd.f32 %v1977_v21, %v1879_v11  ;;  %v2021_v26 = vadd.f32 %v2020_v23, %v1887_v12  ;;  %v1979_v28 = vpop.f32.mrb[51].mxu1  ;;  %v2022_v32 = vpop.f32.mrb[35].mxu0  ;;  %v2025_v36 = vmax.f32 %v1974_v16, 0.0  ;;  %v2027_v22 = vmax.f32 %v2017_v25, 0.0 }
0x2af3   :  { %v1980_v34 = vadd.f32 %v1979_v28, %v1883_v14  ;;  %v2023_v35 = vadd.f32 %v2022_v32, %v1891_v63  ;;  %v2026_v40 = vmax.f32 %v1976_v24, 0.0  ;;  %v2028_v42 = vmax.f32 %v2019_v33, 0.0 }
0x2af4   :  { %v2029_v37 = vmax.f32 %v1978_v48, 0.0  ;;  %v2031_v38 = vmax.f32 %v2021_v26, 0.0 }
0x2af5   :  { %v2030_v43 = vmax.f32 %v1980_v34, 0.0  ;;  %v2032_v44 = vmax.f32 %v2023_v35, 0.0 }
0x2af6   :  { %v2033_v31 = vpack.c.bf16 %v2029_v37, %v2025_v36  ;;  %v2035_v49 = vpack.c.bf16 %v2031_v38, %v2027_v22 }
0x2af7   :  { %v2034_v45 = vpack.c.bf16 %v2030_v43, %v2026_v40  ;;  %v2036_v46 = vpack.c.bf16 %v2032_v44, %v2028_v42 }
0x2af9   :  { %2465 = vmatprep.mubr.bf16.mxu0 %v2034_v45  ;;  %2508 = vmatprep.mubr.bf16.mxu1 %v2036_v46 }
0x2afa   :  { %2466 = vmatmul.mubr.bf16.vlgmr.msra.gmra.mrb[36].mxu0 %v2033_v31  ;;  %2509 = vmatmul.mubr.bf16.vlgmr.msra.gmra.mrb[52].mxu1 %v2035_v49 }
0x2afb   :  { %2952 = vmatpush3.bf16.msra.mxu0 %v3323_v47 }
0x2afc   :  { %2953 = vmatprep.subr.bf16.mxu0 %v3324_v27 }
0x2aff   :  { %2954 = vmatpush3.bf16.msra.mxu0 %v3325_v52 }
0x2b00   :  { %2955 = vmatprep.subr.bf16.mxu0 %v3326_v39 }
0x2b03   :  { %2956 = vmatpush3.bf16.msra.mxu0 %v3327_v50 }
0x2b04   :  { %2957 = vmatprep.subr.bf16.mxu0 %v3328_v53 }
0x2b07   :  { %2958 = vmatpush3.bf16.msra.mxu0 %v3329_v54 }
0x2b08   :  { %2959 = vmatprep.subr.bf16.mxu0 %v3330_v56 }
0x2b0b   :  { %2960 = vmatpush3.bf16.msra.mxu0 %v3331_v57 }
0x2b0c   :  { %2961 = vmatprep.subr.bf16.mxu0 %v3332_v58 }
0x2b0f   :  { %2962 = vmatpush3.bf16.msra.mxu0 %v3333_v29 }
0x2b10   :  { %2963 = vmatprep.subr.bf16.mxu0 %v3334_v59 }
0x2b13   :  { %2964 = vmatpush3.bf16.msra.mxu0 %v3335_v60 }
0x2b14   :  { %2965 = vmatprep.subr.bf16.mxu0 %v3336_v61 }
0x2b17   :  { %2966 = vmatpush3.bf16.msra.mxu0 %v3337_v62 }
0x2bcd   :  { %v2467_v30 = vpop.f32.mrb[36].mxu0  ;;  %v2510_v18 = vpop.f32.mrb[52].mxu1 }
0x2bce   :  { %v2468_v2 = vadd.f32 %v2467_v30, %v2106_v41  ;;  %v2469_v4 = vpop.f32.mrb[37].mxu0  ;;  %v2512_v0 = vpop.f32.mrb[53].mxu1 }
0x2bcf   :  { %v2470_v5 = vadd.f32 %v2469_v4, %v2110_v20  ;;  %v2471_v19 = vpop.f32.mrb[38].mxu0  ;;  %v2514_v51 = vpop.f32.mrb[54].mxu1 }
0x2bd0   :  { %v2511_v55 = vadd.f32 %v2510_v18, %v2468_v2  ;;  %v2472_v8 = vadd.f32 %v2471_v19, %v2106_v41  ;;  %v2473_v9 = vpop.f32.mrb[39].mxu0  ;;  %v2516_v11 = vpop.f32.mrb[55].mxu1 }
0x2bd1   :  { %v2513_v12 = vadd.f32 %v2512_v0, %v2470_v5  ;;  %v2474_v14 = vadd.f32 %v2473_v9, %v2110_v20 }
0x2bd2   :  { %v2515_v63 = vadd.f32 %v2514_v51, %v2472_v8  ;;  %v2519_v7 = vmax.f32 %v2511_v55, 0.0 }
0x2bd3   :  { %v2517_v13 = vadd.f32 %v2516_v11, %v2474_v14  ;;  %v2520_v6 = vmax.f32 %v2513_v12, 0.0 }
0x2bd4   :  { %v2521_v15 = vmax.f32 %v2515_v63, 0.0 }
0x2bd5   :  { %v2522_v3 = vmax.f32 %v2517_v13, 0.0 }
0x2bd6   :  { %v2523_v16 = vpack.c.bf16 %v2521_v15, %v2519_v7 }
0x2bd7   :  { %v2524_v25 = vpack.c.bf16 %v2522_v3, %v2520_v6 }
0x2bd9   :  { %2692 = vmatprep.mubr.bf16.mxu0 %v2524_v25 }
0x2bda   :  { %2693 = vmatmul.mubr.bf16.vlgmr.msra.gmra.mrb[40].mxu0 %v2523_v16 }
0x2cad   :  { %v2967_v10 = vpop.f32.mrb[40].mxu0 }
0x2cae   :  { %v2968_v24 = vpop.f32.mrb[41].mxu0 }
0x2caf   :  { %v2969_v33 = vadd.f32 %v2968_v24, %v2967_v10  ;;  %v2970_v21 = vpop.f32.mrb[42].mxu0 }
0x2cb0   :  { %v2971_v23 = vpop.f32.mrb[43].mxu0 }
0x2cb1   :  { %v2695_v48 = vadd.f32 %v2969_v33, %v2868_v17  ;;  %v2972_v26 = vadd.f32 %v2971_v23, %v2970_v21 }
0x2cb3   :  { %2701 = vst [vmem:[#allocation21] sm:$0xff] %v2695_v48  ;;  %v2698_v28 = vadd.f32 %v2972_v26, %v2868_v17 }
0x2cb5   :  { %2702 = vst [vmem:[#allocation21 + $0x8] sm:$0xff] %v2698_v28 }
0x2cb6   :  { %3675 = shalt.err (!%p3672_p6)
}
0x2cb7   :  { %s3676_s30 = scalar_lea.hbm %s4292_s13, 256 }
0x2cb8   :  { %p3677_p7 = scmp.ne.s32.totalorder %s4292_s13, %s3676_s30  ;;  %p3680_p8 = scmp.lt.u32.totalorder %s3676_s30, %s4292_s13 }
0x2cba   :  { %p3682_p9 = pnand %p3680_p8, %p3677_p7 }
0x2cbc   :  { %3685 = shalt.err (!%p3682_p9)
}
0x2cbd   :  { %2714 = dma.vmem_to_hbm [thread:$0]  %s2709_s23, 256, %s4292_s13, [#allocation8], %s3704_s6, %s3704_s6, %s3705_s19  }
0x2cbe   :  { %3696 = dma.done.wait [#allocation8], 256  }
0x2cbf   :  { %3697 = vsyncadd [#allocation8], 4294967040 }
0x2cc0   :  { %2718 = vsyncpa [#allocation7], 1 }
0x2cc1   :  { %2719 = vsyncpa [#allocation10], 1 }
0x2cc2   :  { %2720 = vsyncpa [#allocation13], 1 }
0x2cc3   :  { %2721 = vsyncpa [#allocation16], 1 }
0x2cc4   :  { %2722 = vsyncpa [#allocation19], 1 }
0x2cc5   :  { %2723 = vsyncpa [#allocation8], 1 }

</bundles_post_ra>
